<compile_context>
chip_gen: v6e
topology: v6e:2x2x1
jax: 0.10.0
libtpu: 0.0.40
codegen_flags: <defaults>
</compile_context>

<pallas_src>
import functools

import jax
import jax.numpy as jnp
from jax import lax
from jax.experimental import pallas as pl
from jax.experimental.pallas import tpu as pltpu


# rows of the f32 "vec" slab (biases + cin==1 small weights)
_ROW_B10, _ROW_B11, _ROW_BD0 = 0, 1, 2
_ROW_B20, _ROW_B21, _ROW_BD1 = 3, 4, 5
_ROW_BDEC, _ROW_WD0, _ROW_W10 = 6, 7, 8


def _round_up(n, m):
    return ((n + m - 1) // m) * m


# ----------------------------------- kernel -----------------------------------

def _make_kernel(K, d0, d1, cin, c1, c2, ws_pad, woff):
    shifts = sorted({(K - 1 - k) * d for d in (d0, d1) for k in range(K)} - {0})

    def kernel(x_ref, vec_ref, w_ref, out_ref):
        Bb, T, _ = x_ref.shape
        N = Bb * T
        # (Bb, T, Cin) -> (Bb*T, Cin): leading-dim collapse, channels stay on lanes.
        x = x_ref[...].reshape(N, cin)

        # Causal masks, built ONCE and reused by every tap of every layer
        # (JAX does not CSE broadcast_in_dim; rebuilding per tap costs VPU slots).
        t_idx = lax.broadcasted_iota(jnp.int32, (Bb, T, 1), 1).reshape(N, 1)
        masks = {s: t_idx >= s for s in shifts}

        def shift(v, s):
            # out[b, t] = v[b, t - s], zero for t < s.  Rolling the flattened (B*T)
            # sublane axis is safe: every wrapped / cross-batch row has t < s and is
            # masked to zero.
            rolled = pltpu.roll(v, shift=s, axis=0)
            return jnp.where(masks[s], rolled, 0.0)

        def wslab(name):
            off, r, c = woff[name]
            return w_ref[off:off + r, :c]        # static slice of the resident bf16 slab

        def vrow(r, c):
            return vec_ref[r:r + 1, :c]          # (1, c) f32 bias / small weight

        def conv(v_f32, v_bf16, name, bias, dilation):
            # Causal dilated Conv1d + Chomp1d as ONE im2col matmul on the MXU.
            # v_bf16 is the single bf16 copy of v_f32 (zero-shift tap), also reused by
            # the caller for the 1x1 downsample matmul; shifted taps are packed to bf16
            # right after masking so the concat + MXU operands are 2-byte.
            cols = [v_bf16 if (K - 1 - k) * dilation == 0
                    else shift(v_f32, (K - 1 - k) * dilation).astype(jnp.bfloat16)
                    for k in range(K)]
            y = jnp.dot(jnp.concatenate(cols, axis=-1), wslab(name),
                        preferred_element_type=jnp.float32)
            return y + bias

        def mm(v_bf16, name, bias):
            return jnp.dot(v_bf16, wslab(name),
                           preferred_element_type=jnp.float32) + bias

        # ------------------- temporal block 0 (dilation d0) -------------------
        if cin == 1:
            # Width-1 contraction: VPU broadcast multiply-add (the MXU would waste
            # 127/255 of its columns).  Weights come from the f32 vec slab.
            acc = jnp.zeros((N, c1), jnp.float32)
            for k in range(K):
                s = (K - 1 - k) * d0
                tap = x if s == 0 else shift(x, s)
                acc = acc + tap * vec_ref[_ROW_W10 + k:_ROW_W10 + k + 1, :c1]
            a1 = jnp.maximum(acc + vrow(_ROW_B10, c1), 0.0)
            res0 = x * vrow(_ROW_WD0, c1) + vrow(_ROW_BD0, c1)   # 1x1 downsample conv
        else:
            x_bf = x.astype(jnp.bfloat16)                        # cast once, reused
            a1 = jnp.maximum(conv(x, x_bf, 'w10', vrow(_ROW_B10, c1), d0), 0.0)
            res0 = mm(x_bf, 'wd0', vrow(_ROW_BD0, c1))
        a2 = jnp.maximum(conv(a1, a1.astype(jnp.bfloat16), 'w11',
                              vrow(_ROW_B11, c1), d0), 0.0)
        y0 = jnp.maximum(a2 + res0, 0.0)          # dropout = identity (eval forward)

        # ------------------- temporal block 1 (dilation d1) -------------------
        y0_bf = y0.astype(jnp.bfloat16)           # ONE bf16 copy: conv1 tap + downsample
        b1 = jnp.maximum(conv(y0, y0_bf, 'w20', vrow(_ROW_B20, c2), d1), 0.0)
        b2 = jnp.maximum(conv(b1, b1.astype(jnp.bfloat16), 'w21',
                              vrow(_ROW_B21, c2), d1), 0.0)
        res1 = mm(y0_bf, 'wd1', vrow(_ROW_BD1, c2))
        y1 = jnp.maximum(b2 + res1, 0.0)

        # -------- encoder tail + decoder, fused to a single MXU matmul --------
        # W = (proj_w.T / T) @ dec_w.T,  b = proj_b @ dec_w.T + dec_b (wrapper-folded).
        feat = jnp.sum(y1.reshape(Bb, T, c2), axis=1)             # (Bb, c2) f32
        recon = jnp.dot(feat.astype(jnp.bfloat16), wslab('wfused'),
                        preferred_element_type=jnp.float32) + vrow(_ROW_BDEC, ws_pad)
        out_ref[...] = recon                      # lane-dense (Bb, ws_pad) store

    return kernel


# ------------------------------ wrapper helpers ------------------------------

def _build_slabs(p, K, cin, c1, c2, T, ws, ws_pad):
    f32 = jnp.float32
    hi = jax.lax.Precision.HIGHEST

    # fold the time-mean (1/T), projection and decoder into one matmul (exact algebra)
    dec_wT = p['dec_w'].astype(f32).T                                       # (emb, ws)
    w_fused = jnp.dot(p['proj_w'].astype(f32).T / T, dec_wT, precision=hi)  # (c2, ws)
    b_fused = jnp.dot(p['proj_b'].astype(f32), dec_wT, precision=hi) \
        + p['dec_b'].astype(f32)

    vw = max(ws_pad, _round_up(max(c1, c2), 128))

    # --- f32 vec slab: all biases + (cin==1) first-conv / downsample weights ---
    vec = jnp.zeros((_round_up(_ROW_W10 + K, 8), vw), f32)
    rows = [(_ROW_B10, p['b0_conv1_b']), (_ROW_B11, p['b0_conv2_b']),
            (_ROW_BD0, p['b0_down_b']), (_ROW_B20, p['b1_conv1_b']),
            (_ROW_B21, p['b1_conv2_b']), (_ROW_BD1, p['b1_down_b']),
            (_ROW_BDEC, b_fused)]
    if cin == 1:
        rows.append((_ROW_WD0, p['b0_down_w'][:, 0, 0]))
        rows += [(_ROW_W10 + k, p['b0_conv1_w'][:, 0, k]) for k in range(K)]
    for r, v in rows:
        v = v.astype(f32)
        vec = vec.at[r, :v.shape[0]].set(v)

    # --- bf16 matmul-weight slab: one DMA stream instead of ~10 tiny ones ---
    def stacked(w):                  # torch (Co, Ci, K) -> im2col weight (K*Ci, Co)
        co, ci, k = w.shape
        return jnp.transpose(w, (2, 1, 0)).reshape(k * ci, co).astype(f32)

    entries = []
    if cin > 1:
        entries += [('w10', stacked(p['b0_conv1_w'])),
                    ('wd0', p['b0_down_w'][:, :, 0].T.astype(f32))]
    entries += [('w11', stacked(p['b0_conv2_w'])),
                ('w20', stacked(p['b1_conv1_w'])),
                ('w21', stacked(p['b1_conv2_w'])),
                ('wd1', p['b1_down_w'][:, :, 0].T.astype(f32)),
                ('wfused', jnp.pad(w_fused, ((0, 0), (0, ws_pad - ws))))]

    woff, off, blocks = {}, 0, []
    for name, w in entries:
        r, c = w.shape
        rp = _round_up(r, 16)                     # bf16 (16,128) sublane alignment
        woff[name] = (off, r, c)
        blocks.append(jnp.pad(w, ((0, rp - r), (0, vw - c))))
        off += rp
    w_slab = jnp.concatenate(blocks, axis=0).astype(jnp.bfloat16)
    return vec, w_slab, woff


def _plan_batch(B, T, cin, c1, c2, K, ws_pad):
    """VMEM byte model -> (batch tile, padded batch, vmem limit)."""
    try:
        cap = int(getattr(pltpu.get_tpu_info(), "vmem_capacity_bytes", 64 << 20))
    except Exception:
        cap = 64 << 20                            # v7x per-TC size = smallest across gens
    budget = min(int(cap * 0.7), 100 << 20)       # headroom for compiler scratch

    vw = max(ws_pad, _round_up(max(c1, c2), 128))
    weight_bytes = 2 * (_round_up(_ROW_W10 + K, 8) * vw * 4           # f32 vec slab
                        + (2 * _round_up(K * c1, 16) + _round_up(K * c2, 16)
                           + _round_up(c1, 16) + _round_up(c2, 16)
                           + _round_up(K * cin, 16) + _round_up(cin, 16)) * vw * 2)

    cmax = max(c1, c2)
    row_bytes = (2 * T * cin * 4 + 2 * ws_pad * 4              # double-buffered x / out
                 + T * (4 * (cin + 2 * c1 + 3 * c2)            # live f32 activations
                        + 2 * (K * cmax + c1 + c2)))           # bf16 taps / im2col concat
    row_bytes = int(1.5 * row_bytes)                           # relayout / temp fudge

    max_rows = max(8, (budget - weight_bytes) // max(row_bytes, 1))
    max_rows = max(min((max_rows // 8) * 8, 512), 8)

    # >= 2 grid steps: shards across v7x's two TensorCores and lets the x/out DMAs
    # pipeline behind compute on every generation (per-step overhead is ~0.35 us).
    half = _round_up(-(-B // 2), 8)
    b_blk = max(8, min(max_rows, half))
    b_pad = max(_round_up(B, b_blk), 2 * b_blk)                # no full-batch fallback
    return b_blk, b_pad, budget


# --------------------------------- public API ---------------------------------

def tcn_autoencoder_forward(x_ncl, params, kernel_size=3):
    """x_ncl: (B, C_in, T) float32  ->  (B, 1, window_size) float32."""
    p = params
    B, Cin, T = x_ncl.shape
    K = kernel_size
    c1 = p['b0_conv1_w'].shape[0]
    c2 = p['b1_conv1_w'].shape[0]
    ws = p['dec_w'].shape[0]
    ws_pad = _round_up(ws, 128)                  # lane-dense (unmasked) output stores
    d0, d1 = 1, 2                                # dilation 2**i for the two blocks

    vec_slab, w_slab, woff = _build_slabs(p, K, Cin, c1, c2, T, ws, ws_pad)
    B_blk, B_pad, vmem_limit = _plan_batch(B, T, Cin, c1, c2, K, ws_pad)

    x_btc = jnp.transpose(x_ncl, (0, 2, 1)).astype(jnp.float32)
    if B_pad != B:
        x_btc = jnp.pad(x_btc, ((0, B_pad - B), (0, 0), (0, 0)))

    kernel = _make_kernel(K, d0, d1, Cin, c1, c2, ws_pad, woff)

    flops = int(2 * B_pad * T * (K * Cin * c1 + K * c1 * c1 + Cin * c1
                                 + K * c1 * c2 + K * c2 * c2 + c1 * c2)
                + 2 * B_pad * c2 * ws_pad)
    bytes_accessed = int(x_btc.size * 4 + vec_slab.size * 4 + w_slab.size * 2
                         + B_pad * ws_pad * 4)

    out = pl.pallas_call(
        kernel,
        out_shape=jax.ShapeDtypeStruct((B_pad, ws_pad), jnp.float32),
        grid=(B_pad // B_blk,),
        in_specs=[
            pl.BlockSpec((B_blk, T, Cin), lambda b: (b, 0, 0)),
            # resident slabs (constant block index; tiny, so default buffering is fine)
            pl.BlockSpec(vec_slab.shape, lambda b: (0, 0)),
            pl.BlockSpec(w_slab.shape, lambda b: (0, 0)),
        ],
        out_specs=pl.BlockSpec((B_blk, ws_pad), lambda b: (b, 0)),
        compiler_params=pltpu.CompilerParams(
            dimension_semantics=("parallel",),
            vmem_limit_bytes=int(vmem_limit)),
        cost_estimate=pl.CostEstimate(flops=flops, transcendentals=0,
                                      bytes_accessed=bytes_accessed),
    )(x_btc, vec_slab, w_slab)

    return out[:B, :ws][:, None, :]              # Decoder's unsqueeze(1)


# ----------------------------- pure-JAX reference -----------------------------

def reference_forward(x_ncl, params, kernel_size=3):
    hi = jax.lax.Precision.HIGHEST               # accurate reference -> tight tolerance

    def conv1d(x, w, b, dilation, pad_left):
        y = lax.conv_general_dilated(
            x, w, window_strides=(1,), padding=[(pad_left, 0)],
            rhs_dilation=(dilation,), dimension_numbers=('NCH', 'OIH', 'NCH'),
            precision=hi)
        return y + b[None, :, None]

    def block(x, pre, dilation):
        pad = (kernel_size - 1) * dilation
        h = jnp.maximum(conv1d(x, params[pre + '_conv1_w'], params[pre + '_conv1_b'],
                               dilation, pad), 0.0)
        h = jnp.maximum(conv1d(h, params[pre + '_conv2_w'], params[pre + '_conv2_b'],
                               dilation, pad), 0.0)
        res = conv1d(x, params[pre + '_down_w'], params[pre + '_down_b'], 1, 0)
        return jnp.maximum(h + res, 0.0)

    h = block(x_ncl, 'b0', 1)
    h = block(h, 'b1', 2)
    feat = jnp.mean(h, axis=2)
    emb = jnp.dot(feat, params['proj_w'].T, precision=hi) + params['proj_b']
    recon = jnp.dot(emb, params['dec_w'].T, precision=hi) + params['dec_b']
    return recon[:, None, :]


# ----------------------------- deterministic init -----------------------------

def init_params(key, input_size, num_channels, kernel_size, emb_dim, window_size):
    keys = jax.random.split(key, 16)
    c1, c2 = num_channels

    def n(k, shape, scale=0.3):
        return scale * jax.random.normal(k, shape, jnp.float32)

    return {
        'b0_conv1_w': n(keys[0], (c1, input_size, kernel_size)),
        'b0_conv1_b': n(keys[1], (c1,)),
        'b0_conv2_w': n(keys[2], (c1, c1, kernel_size)),
        'b0_conv2_b': n(keys[3], (c1,)),
        'b0_down_w':  n(keys[4], (c1, input_size, 1)),
        'b0_down_b':  n(keys[5], (c1,)),
        'b1_conv1_w': n(keys[6], (c2, c1, kernel_size)),
        'b1_conv1_b': n(keys[7], (c2,)),
        'b1_conv2_w': n(keys[8], (c2, c2, kernel_size)),
        'b1_conv2_b': n(keys[9], (c2,)),
        'b1_down_w':  n(keys[10], (c2, c1, 1)),
        'b1_down_b':  n(keys[11], (c2,)),
        'proj_w':     n(keys[12], (emb_dim, c2)),
        'proj_b':     n(keys[13], (emb_dim,)),
        'dec_w':      n(keys[14], (window_size, emb_dim)),
        'dec_b':      n(keys[15], (window_size,)),
    }


if __name__ == "__main__":
    B, Cin, T = 2, 1, 16                 # input_size=1, window_size=16
    num_channels = [16, 32]
    kernel_size, emb_dim, window_size = 3, 64, T

    key = jax.random.PRNGKey(0)
    kx, kp = jax.random.split(key)
    x = jax.random.normal(kx, (B, Cin, T), jnp.float32)
    params = init_params(kp, Cin, num_channels, kernel_size, emb_dim, window_size)

    fwd = jax.jit(functools.partial(tcn_autoencoder_forward, kernel_size=kernel_size))
    out = jax.block_until_ready(fwd(x, params))

    ref = reference_forward(x, params, kernel_size)
    assert out.shape == (B, 1, window_size), out.shape
    max_err = float(jnp.max(jnp.abs(out - ref)))
    # bf16 MXU operands through a handful of small-contraction matmuls; reference runs
    # at HIGHEST precision, so the tolerance is tightened to ~1.5% relative (per review).
    tol = 1e-2 + 1.5e-2 * float(jnp.max(jnp.abs(ref)))
    assert max_err < tol, f"mismatch vs reference: max abs err = {max_err} (tol {tol})"
    print("KERNEL_OK")
</pallas_src>

<mosaic_0001>
module attributes {stable_mosaic.version = 11 : i64} {
  func.func @kernel(%arg0: i32, %arg1: memref<8x16x1xf32, #tpu.memory_space<vmem>>, %arg2: memref<16x128xf32, #tpu.memory_space<vmem>>, %arg3: memref<240x128xbf16, #tpu.memory_space<vmem>>, %arg4: memref<8x128xf32, #tpu.memory_space<vmem>>) attributes {dimension_semantics = [#tpu.dimension_semantics<parallel>], iteration_bounds = array<i64: 2>, scalar_prefetch = 0 : i64, scratch_operands = 0 : i64, tpu.core_type = #tpu.core_type<tc>, window_params = [{transform_indices = @transform_0, window_bounds = array<i64: 8, 16, 1>}, {pipeline_mode = #tpu.pipeline_mode<synchronous>, transform_indices = @transform_1, window_bounds = array<i64: 16, 128>}, {pipeline_mode = #tpu.pipeline_mode<synchronous>, transform_indices = @transform_2, window_bounds = array<i64: 240, 128>}, {transform_indices = @transform_3, window_bounds = array<i64: 8, 128>}]} {
    %c0 = arith.constant 0 : index
    %c0_0 = arith.constant 0 : index
    %c0_1 = arith.constant 0 : index
    %0 = vector.load %arg1[%c0, %c0_0, %c0_1] : memref<8x16x1xf32, #tpu.memory_space<vmem>>, vector<8x16x1xf32>
    %1 = vector.shape_cast %0 : vector<8x16x1xf32> to vector<128x1xf32>
    %2 = tpu.iota {dimensions = array<i32: 1>} : vector<8x16x1xi32>
    %3 = vector.shape_cast %2 : vector<8x16x1xi32> to vector<128x1xi32>
    %c1_i32 = arith.constant 1 : i32
    %4 = vector.broadcast %c1_i32 : i32 to vector<128x1xi32>
    %5 = arith.cmpi sge, %3, %4 : vector<128x1xi32>
    %c2_i32 = arith.constant 2 : i32
    %6 = vector.broadcast %c2_i32 : i32 to vector<128x1xi32>
    %7 = arith.cmpi sge, %3, %6 : vector<128x1xi32>
    %c4_i32 = arith.constant 4 : i32
    %8 = vector.broadcast %c4_i32 : i32 to vector<128x1xi32>
    %9 = arith.cmpi sge, %3, %8 : vector<128x1xi32>
    %cst = arith.constant 0.000000e+00 : f32
    %10 = vector.broadcast %cst : f32 to vector<128x16xf32>
    %c2_i32_2 = arith.constant 2 : i32
    %11 = tpu.dynamic_rotate %1 by %c2_i32_2 dim 0 : vector<128x1xf32>, i32 -> vector<128x1xf32>
    %cst_3 = arith.constant 0.000000e+00 : f32
    %12 = vector.broadcast %cst_3 : f32 to vector<128x1xf32>
    %13 = arith.select %7, %11, %12 : vector<128x1xi1>, vector<128x1xf32>
    %c8 = arith.constant 8 : index
    %c0_4 = arith.constant 0 : index
    %14 = vector.load %arg2[%c8, %c0_4] : memref<16x128xf32, #tpu.memory_space<vmem>>, vector<1x16xf32>
    %15 = vector.broadcast %13 : vector<128x1xf32> to vector<128x16xf32>
    %16 = vector.broadcast %14 : vector<1x16xf32> to vector<128x16xf32>
    %17 = arith.mulf %15, %16 : vector<128x16xf32>
    %18 = arith.addf %10, %17 : vector<128x16xf32>
    %c1_i32_5 = arith.constant 1 : i32
    %19 = tpu.dynamic_rotate %1 by %c1_i32_5 dim 0 : vector<128x1xf32>, i32 -> vector<128x1xf32>
    %cst_6 = arith.constant 0.000000e+00 : f32
    %20 = vector.broadcast %cst_6 : f32 to vector<128x1xf32>
    %21 = arith.select %5, %19, %20 : vector<128x1xi1>, vector<128x1xf32>
    %c9 = arith.constant 9 : index
    %c0_7 = arith.constant 0 : index
    %22 = vector.load %arg2[%c9, %c0_7] : memref<16x128xf32, #tpu.memory_space<vmem>>, vector<1x16xf32>
    %23 = vector.broadcast %21 : vector<128x1xf32> to vector<128x16xf32>
    %24 = vector.broadcast %22 : vector<1x16xf32> to vector<128x16xf32>
    %25 = arith.mulf %23, %24 : vector<128x16xf32>
    %26 = arith.addf %18, %25 : vector<128x16xf32>
    %c10 = arith.constant 10 : index
    %c0_8 = arith.constant 0 : index
    %27 = vector.load %arg2[%c10, %c0_8] : memref<16x128xf32, #tpu.memory_space<vmem>>, vector<1x16xf32>
    %28 = vector.broadcast %1 : vector<128x1xf32> to vector<128x16xf32>
    %29 = vector.broadcast %27 : vector<1x16xf32> to vector<128x16xf32>
    %30 = arith.mulf %28, %29 : vector<128x16xf32>
    %31 = arith.addf %26, %30 : vector<128x16xf32>
    %c0_9 = arith.constant 0 : index
    %c0_10 = arith.constant 0 : index
    %32 = vector.load %arg2[%c0_9, %c0_10] : memref<16x128xf32, #tpu.memory_space<vmem>>, vector<1x16xf32>
    %33 = vector.broadcast %32 : vector<1x16xf32> to vector<128x16xf32>
    %34 = arith.addf %31, %33 : vector<128x16xf32>
    %cst_11 = arith.constant 0.000000e+00 : f32
    %35 = vector.broadcast %cst_11 : f32 to vector<128x16xf32>
    %36 = arith.maximumf %34, %35 : vector<128x16xf32>
    %c7 = arith.constant 7 : index
    %c0_12 = arith.constant 0 : index
    %37 = vector.load %arg2[%c7, %c0_12] : memref<16x128xf32, #tpu.memory_space<vmem>>, vector<1x16xf32>
    %38 = vector.broadcast %1 : vector<128x1xf32> to vector<128x16xf32>
    %39 = vector.broadcast %37 : vector<1x16xf32> to vector<128x16xf32>
    %40 = arith.mulf %38, %39 : vector<128x16xf32>
    %c2 = arith.constant 2 : index
    %c0_13 = arith.constant 0 : index
    %41 = vector.load %arg2[%c2, %c0_13] : memref<16x128xf32, #tpu.memory_space<vmem>>, vector<1x16xf32>
    %42 = vector.broadcast %41 : vector<1x16xf32> to vector<128x16xf32>
    %43 = arith.addf %40, %42 : vector<128x16xf32>
    %44 = arith.truncf %36 : vector<128x16xf32> to vector<128x16xbf16>
    %c1 = arith.constant 1 : index
    %c0_14 = arith.constant 0 : index
    %45 = vector.load %arg2[%c1, %c0_14] : memref<16x128xf32, #tpu.memory_space<vmem>>, vector<1x16xf32>
    %c2_i32_15 = arith.constant 2 : i32
    %46 = tpu.dynamic_rotate %36 by %c2_i32_15 dim 0 : vector<128x16xf32>, i32 -> vector<128x16xf32>
    %cst_16 = arith.constant 0.000000e+00 : f32
    %47 = vector.shape_cast %7 : vector<128x1xi1> to vector<128x1xi1>
    %48 = vector.broadcast %47 : vector<128x1xi1> to vector<128x16xi1>
    %49 = vector.broadcast %cst_16 : f32 to vector<128x16xf32>
    %50 = arith.select %48, %46, %49 : vector<128x16xi1>, vector<128x16xf32>
    %51 = arith.truncf %50 : vector<128x16xf32> to vector<128x16xbf16>
    %c1_i32_17 = arith.constant 1 : i32
    %52 = tpu.dynamic_rotate %36 by %c1_i32_17 dim 0 : vector<128x16xf32>, i32 -> vector<128x16xf32>
    %cst_18 = arith.constant 0.000000e+00 : f32
    %53 = vector.shape_cast %5 : vector<128x1xi1> to vector<128x1xi1>
    %54 = vector.broadcast %53 : vector<128x1xi1> to vector<128x16xi1>
    %55 = vector.broadcast %cst_18 : f32 to vector<128x16xf32>
    %56 = arith.select %54, %52, %55 : vector<128x16xi1>, vector<128x16xf32>
    %57 = arith.truncf %56 : vector<128x16xf32> to vector<128x16xbf16>
    %58 = tpu.concatenate %51, %57, %44 in 1 : vector<128x16xbf16>, vector<128x16xbf16>, vector<128x16xbf16> -> vector<128x48xbf16>
    %c0_19 = arith.constant 0 : index
    %c0_20 = arith.constant 0 : index
    %59 = vector.load %arg3[%c0_19, %c0_20] : memref<240x128xbf16, #tpu.memory_space<vmem>>, vector<48x16xbf16>
    %cst_21 = arith.constant dense<0.000000e+00> : vector<128x16xf32>
    %60 = tpu.matmul %58, %59, %cst_21 {dimension_numbers = #tpu.dot_dimension_numbers<[1], [0], [0], [1], [0, 0, 1, 1], [], []>} : vector<128x48xbf16>, vector<48x16xbf16>, vector<128x16xf32> -> vector<128x16xf32>
    %61 = vector.broadcast %45 : vector<1x16xf32> to vector<128x16xf32>
    %62 = arith.addf %60, %61 : vector<128x16xf32>
    %cst_22 = arith.constant 0.000000e+00 : f32
    %63 = vector.broadcast %cst_22 : f32 to vector<128x16xf32>
    %64 = arith.maximumf %62, %63 : vector<128x16xf32>
    %65 = arith.addf %64, %43 : vector<128x16xf32>
    %cst_23 = arith.constant 0.000000e+00 : f32
    %66 = vector.broadcast %cst_23 : f32 to vector<128x16xf32>
    %67 = arith.maximumf %65, %66 : vector<128x16xf32>
    %68 = arith.truncf %67 : vector<128x16xf32> to vector<128x16xbf16>
    %c3 = arith.constant 3 : index
    %c0_24 = arith.constant 0 : index
    %69 = vector.load %arg2[%c3, %c0_24] : memref<16x128xf32, #tpu.memory_space<vmem>>, vector<1x32xf32>
    %c4_i32_25 = arith.constant 4 : i32
    %70 = tpu.dynamic_rotate %67 by %c4_i32_25 dim 0 : vector<128x16xf32>, i32 -> vector<128x16xf32>
    %cst_26 = arith.constant 0.000000e+00 : f32
    %71 = vector.shape_cast %9 : vector<128x1xi1> to vector<128x1xi1>
    %72 = vector.broadcast %71 : vector<128x1xi1> to vector<128x16xi1>
    %73 = vector.broadcast %cst_26 : f32 to vector<128x16xf32>
    %74 = arith.select %72, %70, %73 : vector<128x16xi1>, vector<128x16xf32>
    %75 = arith.truncf %74 : vector<128x16xf32> to vector<128x16xbf16>
    %c2_i32_27 = arith.constant 2 : i32
    %76 = tpu.dynamic_rotate %67 by %c2_i32_27 dim 0 : vector<128x16xf32>, i32 -> vector<128x16xf32>
    %cst_28 = arith.constant 0.000000e+00 : f32
    %77 = vector.shape_cast %7 : vector<128x1xi1> to vector<128x1xi1>
    %78 = vector.broadcast %77 : vector<128x1xi1> to vector<128x16xi1>
    %79 = vector.broadcast %cst_28 : f32 to vector<128x16xf32>
    %80 = arith.select %78, %76, %79 : vector<128x16xi1>, vector<128x16xf32>
    %81 = arith.truncf %80 : vector<128x16xf32> to vector<128x16xbf16>
    %82 = tpu.concatenate %75, %81, %68 in 1 : vector<128x16xbf16>, vector<128x16xbf16>, vector<128x16xbf16> -> vector<128x48xbf16>
    %c48 = arith.constant 48 : index
    %c0_29 = arith.constant 0 : index
    %83 = vector.load %arg3[%c48, %c0_29] : memref<240x128xbf16, #tpu.memory_space<vmem>>, vector<48x32xbf16>
    %cst_30 = arith.constant dense<0.000000e+00> : vector<128x32xf32>
    %84 = tpu.matmul %82, %83, %cst_30 {dimension_numbers = #tpu.dot_dimension_numbers<[1], [0], [0], [1], [0, 0, 1, 1], [], []>} : vector<128x48xbf16>, vector<48x32xbf16>, vector<128x32xf32> -> vector<128x32xf32>
    %85 = vector.broadcast %69 : vector<1x32xf32> to vector<128x32xf32>
    %86 = arith.addf %84, %85 : vector<128x32xf32>
    %cst_31 = arith.constant 0.000000e+00 : f32
    %87 = vector.broadcast %cst_31 : f32 to vector<128x32xf32>
    %88 = arith.maximumf %86, %87 : vector<128x32xf32>
    %89 = arith.truncf %88 : vector<128x32xf32> to vector<128x32xbf16>
    %c4 = arith.constant 4 : index
    %c0_32 = arith.constant 0 : index
    %90 = vector.load %arg2[%c4, %c0_32] : memref<16x128xf32, #tpu.memory_space<vmem>>, vector<1x32xf32>
    %c4_i32_33 = arith.constant 4 : i32
    %91 = tpu.dynamic_rotate %88 by %c4_i32_33 dim 0 : vector<128x32xf32>, i32 -> vector<128x32xf32>
    %cst_34 = arith.constant 0.000000e+00 : f32
    %92 = vector.shape_cast %9 : vector<128x1xi1> to vector<128x1xi1>
    %93 = vector.broadcast %92 : vector<128x1xi1> to vector<128x32xi1>
    %94 = vector.broadcast %cst_34 : f32 to vector<128x32xf32>
    %95 = arith.select %93, %91, %94 : vector<128x32xi1>, vector<128x32xf32>
    %96 = arith.truncf %95 : vector<128x32xf32> to vector<128x32xbf16>
    %c2_i32_35 = arith.constant 2 : i32
    %97 = tpu.dynamic_rotate %88 by %c2_i32_35 dim 0 : vector<128x32xf32>, i32 -> vector<128x32xf32>
    %cst_36 = arith.constant 0.000000e+00 : f32
    %98 = vector.shape_cast %7 : vector<128x1xi1> to vector<128x1xi1>
    %99 = vector.broadcast %98 : vector<128x1xi1> to vector<128x32xi1>
    %100 = vector.broadcast %cst_36 : f32 to vector<128x32xf32>
    %101 = arith.select %99, %97, %100 : vector<128x32xi1>, vector<128x32xf32>
    %102 = arith.truncf %101 : vector<128x32xf32> to vector<128x32xbf16>
    %103 = tpu.concatenate %96, %102, %89 in 1 : vector<128x32xbf16>, vector<128x32xbf16>, vector<128x32xbf16> -> vector<128x96xbf16>
    %c96 = arith.constant 96 : index
    %c0_37 = arith.constant 0 : index
    %104 = vector.load %arg3[%c96, %c0_37] : memref<240x128xbf16, #tpu.memory_space<vmem>>, vector<96x32xbf16>
    %cst_38 = arith.constant dense<0.000000e+00> : vector<128x32xf32>
    %105 = tpu.matmul %103, %104, %cst_38 {dimension_numbers = #tpu.dot_dimension_numbers<[1], [0], [0], [1], [0, 0, 1, 1], [], []>} : vector<128x96xbf16>, vector<96x32xbf16>, vector<128x32xf32> -> vector<128x32xf32>
    %106 = vector.broadcast %90 : vector<1x32xf32> to vector<128x32xf32>
    %107 = arith.addf %105, %106 : vector<128x32xf32>
    %cst_39 = arith.constant 0.000000e+00 : f32
    %108 = vector.broadcast %cst_39 : f32 to vector<128x32xf32>
    %109 = arith.maximumf %107, %108 : vector<128x32xf32>
    %c5 = arith.constant 5 : index
    %c0_40 = arith.constant 0 : index
    %110 = vector.load %arg2[%c5, %c0_40] : memref<16x128xf32, #tpu.memory_space<vmem>>, vector<1x32xf32>
    %c192 = arith.constant 192 : index
    %c0_41 = arith.constant 0 : index
    %111 = vector.load %arg3[%c192, %c0_41] : memref<240x128xbf16, #tpu.memory_space<vmem>>, vector<16x32xbf16>
    %cst_42 = arith.constant dense<0.000000e+00> : vector<128x32xf32>
    %112 = tpu.matmul %68, %111, %cst_42 {dimension_numbers = #tpu.dot_dimension_numbers<[1], [0], [0], [1], [0, 0, 1, 1], [], []>} : vector<128x16xbf16>, vector<16x32xbf16>, vector<128x32xf32> -> vector<128x32xf32>
    %113 = vector.broadcast %110 : vector<1x32xf32> to vector<128x32xf32>
    %114 = arith.addf %112, %113 : vector<128x32xf32>
    %115 = arith.addf %109, %114 : vector<128x32xf32>
    %cst_43 = arith.constant 0.000000e+00 : f32
    %116 = vector.broadcast %cst_43 : f32 to vector<128x32xf32>
    %117 = arith.maximumf %115, %116 : vector<128x32xf32>
    %118 = vector.shape_cast %117 : vector<128x32xf32> to vector<8x16x32xf32>
    %cst_44 = arith.constant dense<0.000000e+00> : vector<8x32xf32>
    %119 = vector.multi_reduction <add>, %118, %cst_44 [1] : vector<8x16x32xf32> to vector<8x32xf32>
    %120 = arith.truncf %119 : vector<8x32xf32> to vector<8x32xbf16>
    %c208 = arith.constant 208 : index
    %c0_45 = arith.constant 0 : index
    %121 = vector.load %arg3[%c208, %c0_45] : memref<240x128xbf16, #tpu.memory_space<vmem>>, vector<32x128xbf16>
    %cst_46 = arith.constant dense<0.000000e+00> : vector<8x128xf32>
    %122 = tpu.matmul %120, %121, %cst_46 {dimension_numbers = #tpu.dot_dimension_numbers<[1], [0], [0], [1], [0, 0, 1, 1], [], []>} : vector<8x32xbf16>, vector<32x128xbf16>, vector<8x128xf32> -> vector<8x128xf32>
    %c6 = arith.constant 6 : index
    %c0_47 = arith.constant 0 : index
    %123 = vector.load %arg2[%c6, %c0_47] : memref<16x128xf32, #tpu.memory_space<vmem>>, vector<1x128xf32>
    %124 = vector.broadcast %123 : vector<1x128xf32> to vector<8x128xf32>
    %125 = arith.addf %122, %124 : vector<8x128xf32>
    %c0_48 = arith.constant 0 : index
    %c0_49 = arith.constant 0 : index
    %126 = vector.load %arg4[%c0_48, %c0_49] : memref<8x128xf32, #tpu.memory_space<vmem>>, vector<8x128xf32>
    tpu.vector_store %arg4[%c0_48, %c0_49], %125 {strides = array<i32>} : memref<8x128xf32, #tpu.memory_space<vmem>>, vector<8x128xf32>,
    return
  }
  func.func @transform_0(%arg0: i32) -> (i32, i32, i32) {
    %c0_i32 = arith.constant 0 : i32
    %c0_i32_0 = arith.constant 0 : i32
    %c0_i32_1 = arith.constant 0 : i32
    return %arg0, %c0_i32, %c0_i32_0 : i32, i32, i32
  }
  func.func @transform_1(%arg0: i32) -> (i32, i32) {
    %c0_i32 = arith.constant 0 : i32
    %c0_i32_0 = arith.constant 0 : i32
    %c0_i32_1 = arith.constant 0 : i32
    return %c0_i32, %c0_i32_0 : i32, i32
  }
  func.func @transform_2(%arg0: i32) -> (i32, i32) {
    %c0_i32 = arith.constant 0 : i32
    %c0_i32_0 = arith.constant 0 : i32
    %c0_i32_1 = arith.constant 0 : i32
    return %c0_i32, %c0_i32_0 : i32, i32
  }
  func.func @transform_3(%arg0: i32) -> (i32, i32) {
    %c0_i32 = arith.constant 0 : i32
    %c0_i32_0 = arith.constant 0 : i32
    return %arg0, %c0_i32 : i32, i32
  }
}

</mosaic_0001>

<bundles_post_ra>
// kernel: tcn_autoencoder_forward.1
= control target key start
LH: loop header
LB: loop body
LE: loop exit
PB: predicated region body
PF: predicated region fallthrough
CT: control target
= control target key end

     0   :  { %s2577_s12 = smov 0   ;;  %s3885_s0 = inlined_call_operand.vmem [shape: f32[16,16,1], index: 0, kind: input, shape index: {}]   ;;  %s3886_s1 = inlined_call_operand.vmem [shape: f32[16,128], index: 1, kind: input, shape index: {}]   ;;  %s3887_s2 = inlined_call_operand.vmem [shape: bf16[240,128], index: 2, kind: input, shape index: {}]   ;;  %s3888_s3 = inlined_call_operand.vmem [shape: f32[16,128], index: 3, kind: output, shape index: {}]  }
   0x1 LB: > { %s2583_s13 = sadd.s32 4294967295, %s2549_s12   ;;  %p2299_p0 = scmp.ge.s32.totalorder %s2549_s12, 1  ;;  %s2549_s12 = sphi %s2577_s12, %s13_s12  }
   0x2   : > { %p139_p1 = scmp.lt.s32.totalorder %s2549_s12, 3 }
   0x4   : > { %p140_p2 = pnand %p2299_p0, %p139_p1 }
   0x5   : > { %s2300_s14 = sshll.u32 (!%p140_p2), %s2583_s13, 3  ;;  %s2552_s6 = smov (!%p140_p2), 16  }
   0x6   : > { %143 = sbr.rel (%p140_p2) target bundleno = 1506 (0x5e2), region = 32  ;;  %p164_p3 = scmp.lt.s32.totalorder (!%p140_p2), %s2300_s14, 15 }
   0x7   : > { %s2553_s7 = smov (!%p140_p2), 32   ;;  %s2554_s10 = smov (!%p140_p2), 64  }
   0x8   : > { %p170_p4 = scmp.lt.s32.totalorder (!%p140_p2), %s2583_s13, 1 }
   0xb   : > { %v191_v0 = vlaneseq  ;;  %v2551_v1 = vmov 0   ;;  %s3890_s14 = smov (!%p164_p3, %s2300_s14), 15  ;;  %vm905_vm4 = vcmask 130048   ;;  %vm930_vm5 = vcmask 261120   ;;  %s3892_s13 = smov (!%p170_p4, %s2583_s13), 1 }
   0xc   : > { %2527 = vset.pattern.permute.xlu1 %v2551_v1  ;;  %2526 = vset.pattern.permute.xlu0 %v2551_v1  ;;  %s2365_s15 = sshll.u32 %s3890_s14, 4  ;;  %vm975_vm6 = vcmask 392192   ;;  %vm1701_vm9 = vcmask 523264   ;;  %vm1770_vm10 = vcmask 785408   ;;  %vm2556_vm11 = vmmov 0   ;;  %s2303_s22 = sshll.u32 %s3892_s13, 3 }
   0xd   : > { %v2588_v2 = vshrl.u32 %v191_v0, 7  ;;  %s2593_s18 = scalar_lea.vmem %s3885_s0, %s2365_s15  ;;  %vm2171_vm12 = vcmask 1041409   ;;  %vm2173_vm13 = vcmask 1042434   ;;  %vm2175_vm14 = vcmask 1043459   ;;  %s173_s27 = scalar_lea.vmem %s3888_s3, %s2303_s22 }
   0xe   : > { %v2596_v3 = vld [vmem:[%s2593_s18 + $0x70] sm:$0xff]  ;;  %v190_v4 = vld [vmem:[%s2593_s18 + $0x78] sm:$0xff]  ;;  %v175_v5 = vld [vmem:[%s2593_s18] sm:$0xff]  ;;  %vm2177_vm15 = vcmask 1044484  }
   0xf   : > { %vm216_vm0 = vcmp.lt.s32.totalorder %v2588_v2, 2  ;;  %vm382_vm1 = vcmp.lt.s32.totalorder %v2588_v2, 1  ;;  %vm194_vm2 = vcmp.ge.s32.totalorder %v2588_v2, 1  ;;  %v380_v6 = vrot.slane %v2596_v3, 7  ;;  %v176_v10 = vld [vmem:[%s2593_s18 + $0x8] sm:$0xff]  ;;  %v177_v11 = vld [vmem:[%s2593_s18 + $0x10] sm:$0xff] }
  0x10   : > { %v381_v7 = vrot.slane %v190_v4, 7  ;;  %v214_v8 = vrot.slane %v2596_v3, 6  ;;  %v215_v9 = vrot.slane %v190_v4, 6  ;;  %v366_v12 = vrot.slane %v175_v5, 7  ;;  %v178_v28 = vld [vmem:[%s2593_s18 + $0x18] sm:$0xff]  ;;  %v2634_v33 = vld [vmem:[%s2593_s18 + $0x68] sm:$0xff] }
  0x11   : > { %v200_v13 = vrot.slane %v175_v5, 6  ;;  %v201_v14 = vrot.slane %v176_v10, 6  ;;  %v202_v15 = vrot.slane %v177_v11, 6  ;;  %v367_v21 = vrot.slane %v176_v10, 7  ;;  %v179_v37 = vld [vmem:[%s2593_s18 + $0x20] sm:$0xff]  ;;  %v180_v43 = vld [vmem:[%s2593_s18 + $0x28] sm:$0xff] }
  0x12   : > { %v383_v16 = vsel %vm382_vm1, %v380_v6, %v381_v7  ;;  %v217_v17 = vsel %vm216_vm0, %v214_v8, %v215_v9  ;;  %v398_v18 = vsel %vm382_vm1, %v381_v7, %v366_v12  ;;  %vm196_vm3 = vcmp.ge.s32.totalorder %v2588_v2, 2  ;;  %v181_v45 = vld [vmem:[%s2593_s18 + $0x30] sm:$0xff]  ;;  %v182_v54 = vld [vmem:[%s2593_s18 + $0x38] sm:$0xff]  ;;  %v183_v63 = vld [vmem:[%s2593_s18 + $0x40] sm:$0xff] }
  0x13   : > { %493 = vperm.xlu1 %2527, %v383_v16   ;;  %327 = vperm.xlu0 %2526, %v217_v17   ;;  %v399_v19 = vsel %vm194_vm2, %v398_v18, 0.0  ;;  %v231_v20 = vsel %vm216_vm0, %v200_v13, %v201_v14  ;;  %v230_v22 = vsel %vm216_vm0, %v201_v14, %v202_v15  ;;  %v368_v23 = vrot.slane %v177_v11, 7  ;;  %v185_v7 = vld [vmem:[%s2593_s18 + $0x50] sm:$0xff]  ;;  %v186_v16 = vld [vmem:[%s2593_s18 + $0x58] sm:$0xff] }
  0x14   : > { %v235_v24 = vsel %vm196_vm3, %v230_v22, 0.0  ;;  %v397_v25 = vsel %vm382_vm1, %v366_v12, %v367_v21  ;;  %v232_v27 = vsel %vm216_vm0, %v215_v9, %v200_v13  ;;  %v369_v31 = vrot.slane %v178_v28, 7 }
  0x15   : > { %v396_v26 = vsel %vm382_vm1, %v367_v21, %v368_v23  ;;  %v233_v30 = vsel %vm196_vm3, %v232_v27, 0.0  ;;  %v203_v32 = vrot.slane %v178_v28, 6  ;;  %v213_v36 = vrot.slane %v2634_v33, 6 }
  0x16   : > { %v401_v29 = vsel %vm194_vm2, %v396_v26, 0.0  ;;  %v395_v34 = vsel %vm382_vm1, %v368_v23, %v369_v31  ;;  %v379_v38 = vrot.slane %v2634_v33, 7  ;;  %v204_v41 = vrot.slane %v179_v37, 6 }
  0x17   : > { %418 = vperm.xlu1 %2527, %v399_v19   ;;  %257 = vperm.xlu0 %2526, %v231_v20   ;;  %v229_v35 = vsel %vm216_vm0, %v202_v15, %v203_v32  ;;  %v2647_v39 = vsel %vm216_vm0, %v213_v36, %v214_v8  ;;  %v370_v44 = vrot.slane %v179_v37, 7  ;;  %v205_v47 = vrot.slane %v180_v43, 6 }
  0x18   : > { %v2653_v40 = vsel %vm382_vm1, %v379_v38, %v380_v6  ;;  %v228_v42 = vsel %vm216_vm0, %v203_v32, %v204_v41  ;;  %v206_v49 = vrot.slane %v181_v45, 6  ;;  %v371_v52 = vrot.slane %v180_v43, 7 }
  0x19   : > { %v237_v46 = vsel %vm196_vm3, %v228_v42, 0.0  ;;  %v394_v48 = vsel %vm382_vm1, %v369_v31, %v370_v44  ;;  %v227_v50 = vsel %vm216_vm0, %v204_v41, %v205_v47  ;;  %v372_v55 = vrot.slane %v181_v45, 7 }
  0x1a   : > { %v403_v51 = vsel %vm194_vm2, %v394_v48, 0.0  ;;  %v226_v53 = vsel %vm216_vm0, %v205_v47, %v206_v49  ;;  %v393_v56 = vsel %vm382_vm1, %v370_v44, %v371_v52  ;;  %v207_v58 = vrot.slane %v182_v54, 6 }
  0x1b   : > { %262 = vperm.xlu1 %2527, %v235_v24   ;;  %423 = vperm.xlu0 %2526, %v397_v25   ;;  %v239_v57 = vsel %vm196_vm3, %v226_v53, 0.0  ;;  %v392_v59 = vsel %vm382_vm1, %v371_v52, %v372_v55  ;;  %v373_v62 = vrot.slane %v182_v54, 7  ;;  %v208_v1 = vrot.slane %v183_v63, 6  ;;  %v187_v25 = vld [vmem:[%s2593_s18 + $0x60] sm:$0xff]  ;;  %v2754_v52 = vld [vmem:[%s3886_s1 + $0xa] ss:$0 sm:$0xff] }
  0x1c   : > { %v225_v60 = vsel %vm216_vm0, %v206_v49, %v207_v58  ;;  %v405_v61 = vsel %vm194_vm2, %v392_v59, 0.0  ;;  %v374_v6 = vrot.slane %v183_v63, 7  ;;  %v376_v17 = vrot.slane %v185_v7, 7 }
  0x1d   : > { %v391_v0 = vsel %vm382_vm1, %v372_v55, %v373_v62  ;;  %v211_v20 = vrot.slane %v186_v16, 6  ;;  %v377_v24 = vrot.slane %v186_v16, 7  ;;  %v212_v27 = vrot.slane %v187_v25, 6 }
  0x1e   : > { %vm1162_vm7 = vcmp.lt.s32.totalorder %v2588_v2, 4  ;;  %vm198_vm8 = vcmp.ge.s32.totalorder %v2588_v2, 4 }
  0x1f   : > { %428 = vperm.xlu1 %2527, %v401_v29   ;;  %252 = vperm.xlu0 %2526, %v233_v30   ;;  %v387_v26 = vsel %vm382_vm1, %v376_v17, %v377_v24  ;;  %v378_v29 = vrot.slane %v187_v25, 7  ;;  %v219_v32 = vsel %vm216_vm0, %v212_v27, %v213_v36  ;;  %v413_v36 = vsel %vm194_vm2, %v2653_v40, 0.0 }
  0x21   : > { %v386_v31 = vsel %vm382_vm1, %v377_v24, %v378_v29 }
  0x23   : > { %433 = vperm.xlu1 %2527, %v395_v34   ;;  %267 = vperm.xlu0 %2526, %v229_v35   ;;  %v411_v34 = vsel %vm194_vm2, %v386_v31, 0.0  ;;  %v385_v35 = vsel %vm382_vm1, %v378_v29, %v379_v38  ;;  %v2528_v38 = vld [vmem:[%s3887_s2 + $0x10] sm:$0xff]  }
  0x24   : > { %2414 = vmatprep.subr.bf16.mxu0 %v2528_v38 }
  0x25   : > { %2415 = vmatpush3.bf16.msra.mxu0 %v2528_v38 }
  0x27   : > { %610 = vperm.xlu1 %2527, %v190_v4   ;;  %535 = vperm.xlu0 %2526, %v175_v5   ;;  %v224_v4 = vsel %vm216_vm0, %v207_v58, %v208_v1  ;;  %v184_v5 = vld [vmem:[%s2593_s18 + $0x48] sm:$0xff] }
  0x28   : > { %v241_v8 = vsel %vm196_vm3, %v224_v4, 0.0  ;;  %v209_v9 = vrot.slane %v184_v5, 6  ;;  %v375_v14 = vrot.slane %v184_v5, 7 }
  0x2a   : > { %v223_v12 = vsel %vm216_vm0, %v208_v1, %v209_v9  ;;  %v389_v18 = vsel %vm382_vm1, %v374_v6, %v375_v14  ;;  %v388_v21 = vsel %vm382_vm1, %v375_v14, %v376_v17 }
  0x2b   : > { %545 = vperm.xlu1 %2527, %v177_v11   ;;  %540 = vperm.xlu0 %2526, %v176_v10   ;;  %v390_v10 = vsel %vm382_vm1, %v373_v62, %v374_v6  ;;  %v210_v11 = vrot.slane %v185_v7, 6  ;;  %v409_v23 = vsel %vm194_vm2, %v388_v21, 0.0  ;;  %v2770_v62 = vld [vmem:[%s3886_s1] ss:$0 sm:$0xff] }
  0x2c   : > { %v407_v13 = vsel %vm194_vm2, %v390_v10, 0.0 }
  0x2d   : > { %v222_v15 = vsel %vm216_vm0, %v209_v9, %v210_v11  ;;  %v221_v22 = vsel %vm216_vm0, %v210_v11, %v211_v20 }
  0x2e   : > { %v243_v19 = vsel %vm196_vm3, %v222_v15, 0.0  ;;  %v2529_v15 = vld [vmem:[%s3887_s2 + $0x8] sm:$0xff]  }
  0x2f   : > { %272 = vperm.xlu1 %2527, %v237_v46   ;;  %550 = vperm.xlu0 %2526, %v178_v28   ;;  %v220_v28 = vsel %vm216_vm0, %v211_v20, %v212_v27  ;;  %v2530_v27 = vld [vmem:[%s3887_s2] sm:$0xff]  }
  0x30   : > { %v245_v30 = vsel %vm196_vm3, %v220_v28, 0.0  ;;  %2416 = vmatprep.subr.bf16.mxu0 %v2529_v15 }
  0x31   : > { %2417 = vmatpush3.bf16.msra.mxu0 %v2529_v15 }
  0x32   : > { %2418 = vmatprep.subr.bf16.mxu0 %v2530_v27 }
  0x33   : > { %277 = vperm.xlu1 %2527, %v227_v50   ;;  %438 = vperm.xlu0 %2526, %v403_v51  }
  0x35   : > { %2419 = vmatpush3.bf16.msra.mxu0 %v2530_v27 }
  0x37   : > { %443 = vperm.xlu1 %2527, %v393_v56   ;;  %282 = vperm.xlu0 %2526, %v239_v57  }
  0x3b   : > { %287 = vperm.xlu1 %2527, %v225_v60   ;;  %448 = vperm.xlu0 %2526, %v405_v61  }
  0x3f   : > { %555 = vperm.xlu1 %2527, %v179_v37   ;;  %453 = vperm.xlu0 %2526, %v391_v0   ;;  %v247_v37 = vsel %vm196_vm3, %v2647_v39, 0.0 }
  0x43   : > { %565 = vperm.xlu1 %2527, %v181_v45   ;;  %560 = vperm.xlu0 %2526, %v180_v43  }
  0x47   : > { %292 = vperm.xlu1 %2527, %v241_v8   ;;  %570 = vperm.xlu0 %2526, %v182_v54  }
  0x4b   : > { %297 = vperm.xlu1 %2527, %v223_v12   ;;  %458 = vperm.xlu0 %2526, %v407_v13  }
  0x4f   : > { %463 = vperm.xlu1 %2527, %v389_v18   ;;  %302 = vperm.xlu0 %2526, %v243_v19  }
  0x53   : > { %307 = vperm.xlu1 %2527, %v221_v22   ;;  %468 = vperm.xlu0 %2526, %v409_v23  }
  0x57   : > { %575 = vperm.xlu1 %2527, %v183_v63   ;;  %473 = vperm.xlu0 %2526, %v387_v26  }
  0x5b   : > { %585 = vperm.xlu1 %2527, %v185_v7   ;;  %580 = vperm.xlu0 %2526, %v184_v5  }
  0x5f   : > { %312 = vperm.xlu1 %2527, %v245_v30   ;;  %590 = vperm.xlu0 %2526, %v186_v16  }
  0x63   : > { %317 = vperm.xlu1 %2527, %v219_v32   ;;  %478 = vperm.xlu0 %2526, %v411_v34  }
  0x67   : > { %483 = vperm.xlu1 %2527, %v385_v35   ;;  %322 = vperm.xlu0 %2526, %v247_v37  }
  0x6b   : > { %595 = vperm.xlu1 %2527, %v187_v25   ;;  %488 = vperm.xlu0 %2526, %v413_v36  }
  0x6f   : > { %605 = vperm.xlu1 %2527, %v2596_v3   ;;  %600 = vperm.xlu0 %2526, %v2634_v33   ;;  %v2741_v3 = vld [vmem:[%s3886_s1 + $0x9] ss:$0 sm:$0xff]  ;;  %v2746_v33 = vld [vmem:[%s3886_s1 + $0x8] ss:$0 sm:$0xff] }
  0x8e   : > { %v494_v41 = vpop.permute.xlu1 %493  ;;  %v328_v39 = vpop.permute.xlu0 %327 }
  0x8f   : > { %v515_v47 = vmul.f32 %v2741_v3, %v494_v41  ;;  %v349_v48 = vmul.f32 %v2746_v33, %v328_v39 }
  0x91   : > { %v531_v54 = vadd.f32 %v515_v47, %v349_v48 }
  0x92   : > { %v419_v42 = vpop.permute.xlu1 %418  ;;  %v258_v43 = vpop.permute.xlu0 %257 }
  0x93   : > { %v500_v53 = vmul.f32 %v2741_v3, %v419_v42  ;;  %v335_v4 = vmul.f32 %v2746_v33, %v258_v43 }
  0x96   : > { %v263_v44 = vpop.permute.xlu1 %262  ;;  %v424_v45 = vpop.permute.xlu0 %423 }
  0x97   : > { %v501_v61 = vmul.f32 %v2741_v3, %v424_v45  ;;  %v336_v63 = vmul.f32 %v2746_v33, %v263_v44 }
  0x99   : > { %v517_v11 = vadd.f32 %v501_v61, %v335_v4 }
  0x9a   : > { %v429_v46 = vpop.permute.xlu1 %428  ;;  %v253_v40 = vpop.permute.xlu0 %252 }
  0x9b   : > { %v334_v51 = vmul.f32 %v2746_v33, %v253_v40  ;;  %v502_v57 = vmul.f32 %v2741_v3, %v429_v46 }
  0x9d   : > { %v516_v58 = vadd.f32 %v500_v53, %v334_v51  ;;  %v518_v7 = vadd.f32 %v502_v57, %v336_v63 }
  0x9e   : > { %v434_v49 = vpop.permute.xlu1 %433  ;;  %v268_v50 = vpop.permute.xlu0 %267 }
  0x9f   : > { %v503_v12 = vmul.f32 %v2741_v3, %v434_v49  ;;  %v337_v13 = vmul.f32 %v2746_v33, %v268_v50 }
  0xa1   : > { %v519_v23 = vadd.f32 %v503_v12, %v337_v13 }
  0xa2   : > { %v2757_v55 = vpop.permute.xlu1 %610  ;;  %v2759_v56 = vpop.permute.xlu0 %535 }
  0xa3   : > { %v632_v59 = vmul.f32 %v2754_v52, %v2757_v55  ;;  %v617_v60 = vmul.f32 %v2754_v52, %v2759_v56 }
  0xa5   : > { %v648_v0 = vadd.f32 %v632_v59, %v531_v54  ;;  %v633_v1 = vadd.f32 %v617_v60, %v516_v58 }
  0xa6   : > { %v2774_v5 = vpop.permute.xlu1 %545  ;;  %v2776_v6 = vpop.permute.xlu0 %540 }
  0xa7   : > { %v669_v8 = vadd.f32 %v2770_v62, %v648_v0  ;;  %v654_v9 = vadd.f32 %v2770_v62, %v633_v1  ;;  %v619_v10 = vmul.f32 %v2754_v52, %v2774_v5  ;;  %v618_v14 = vmul.f32 %v2754_v52, %v2776_v6 }
  0xa9   : > { %v2789_v16 = vmax.f32 %v669_v8, 0.0  ;;  %v670_v17 = vmax.f32 %v654_v9, 0.0  ;;  %v635_v18 = vadd.f32 %v619_v10, %v518_v7  ;;  %v634_v19 = vadd.f32 %v618_v14, %v517_v11 }
  0xaa   : > { %v273_v20 = vpop.permute.xlu1 %272  ;;  %v2791_v21 = vpop.permute.xlu0 %550 }
  0xab   : > { %v656_v22 = vadd.f32 %v2770_v62, %v635_v18  ;;  %v655_v24 = vadd.f32 %v2770_v62, %v634_v19  ;;  %v620_v25 = vmul.f32 %v2754_v52, %v2791_v21  ;;  %v797_v26 = vrot.slane %v670_v17, 7 }
  0xac   : > { %v752_v28 = vrot.slane %v2789_v16, 6  ;;  %v737_v29 = vrot.slane %v670_v17, 6  ;;  %v812_v31 = vrot.slane %v2789_v16, 7  ;;  %v338_v11 = vmul.f32 %v2746_v33, %v273_v20 }
  0xad   : > { %v672_v30 = vmax.f32 %v656_v22, 0.0  ;;  %v671_v32 = vmax.f32 %v655_v24, 0.0  ;;  %v636_v34 = vadd.f32 %v620_v25, %v519_v23 }
  0xae   : > { %v278_v35 = vpop.permute.xlu1 %277  ;;  %v439_v37 = vpop.permute.xlu0 %438  ;;  %v828_v38 = vsel %vm382_vm1, %v812_v31, %v797_v26  ;;  %v768_v45 = vsel %vm216_vm0, %v752_v28, %v737_v29 }
  0xaf   : > { %v739_v36 = vrot.slane %v672_v30, 6  ;;  %v738_v41 = vrot.slane %v671_v32, 6  ;;  %v657_v39 = vadd.f32 %v2770_v62, %v636_v34  ;;  %v798_v42 = vrot.slane %v671_v32, 7 }
  0xb0   : > { %v833_v43 = vsel %vm194_vm2, %v828_v38, 0.0  ;;  %v799_v44 = vrot.slane %v672_v30, 7  ;;  %v2829_v58 = vsel %vm196_vm3, %v768_v45, 0.0  ;;  %v504_v7 = vmul.f32 %v2741_v3, %v439_v37 }
  0xb1   : > { %v2813_v46 = vmax.f32 %v657_v39, 0.0  ;;  %v827_v48 = vsel %vm382_vm1, %v797_v26, %v798_v42  ;;  %v2819_v49 = vsel %vm216_vm0, %v737_v29, %v738_v41  ;;  %v766_v50 = vsel %vm216_vm0, %v738_v41, %v739_v36 }
  0xb2   : > { %v444_v40 = vpop.permute.xlu1 %443  ;;  %v283_v47 = vpop.permute.xlu0 %282  ;;  %v849_v51 = vpack.c.bf16 %v827_v48, %v833_v43  ;;  %v826_v53 = vsel %vm382_vm1, %v798_v42, %v799_v44  ;;  %v789_v59 = vpack.c.bf16 %v2819_v49, %v2829_v58  ;;  %v2840_v1 = vsel %vm196_vm3, %v766_v50, 0.0 }
  0xb3   : > { %v740_v54 = vrot.slane %v2813_v46, 6  ;;  %v800_v57 = vrot.slane %v2813_v46, 7  ;;  %v835_v0 = vsel %vm194_vm2, %v826_v53, 0.0  ;;  %v728_v8 = vpack.c.bf16 %v671_v32, %v670_v17 }
  0xb4   : > { %865 = vrot.lane.b32.xlu0 %v849_v51, %s2552_s6  ;;  %v505_v12 = vmul.f32 %v2741_v3, %v444_v40  ;;  %v520_v15 = vadd.f32 %v504_v7, %v338_v11  ;;  %v729_v19 = vpack.c.bf16 %v2813_v46, %v672_v30  ;;  %v339_v20 = vmul.f32 %v2746_v33, %v278_v35 }
  0xb5   : > { %v825_v63 = vsel %vm382_vm1, %v799_v44, %v800_v57  ;;  %v2844_v4 = vsel %vm216_vm0, %v739_v36, %v740_v54  ;;  %v340_v22 = vmul.f32 %v2746_v33, %v283_v47 }
  0xb6   : > { %v288_v60 = vpop.permute.xlu1 %287  ;;  %v449_v61 = vpop.permute.xlu0 %448  ;;  %v850_v9 = vpack.c.bf16 %v825_v63, %v835_v0  ;;  %v790_v10 = vpack.c.bf16 %v2844_v4, %v2840_v1  ;;  %v521_v24 = vadd.f32 %v505_v12, %v339_v20 }
  0xb7   : > { %v506_v18 = vmul.f32 %v2741_v3, %v449_v61  ;;  %v341_v38 = vmul.f32 %v2746_v33, %v288_v60 }
  0xb8   : > { %889 = vrot.lane.b32.xlu0 %v728_v8, %s2553_s7  ;;  %867 = vrot.lane.b32.xlu1 %v850_v9, %s2552_s6 }
  0xb9   : > { %v522_v27 = vadd.f32 %v506_v18, %v340_v22 }
  0xba   : > { %v2853_v13 = vpop.permute.xlu1 %555  ;;  %v454_v14 = vpop.permute.xlu0 %453 }
  0xbb   : > { %v621_v17 = vmul.f32 %v2754_v52, %v2853_v13  ;;  %v507_v34 = vmul.f32 %v2741_v3, %v454_v14 }
  0xbc   : > { %891 = vrot.lane.b32.xlu1 %v729_v19, %s2553_s7 }
  0xbd   : > { %v637_v23 = vadd.f32 %v621_v17, %v520_v15  ;;  %v523_v45 = vadd.f32 %v507_v34, %v341_v38 }
  0xbe   : > { %v2862_v25 = vpop.permute.xlu1 %565  ;;  %v2864_v26 = vpop.permute.xlu0 %560 }
  0xbf   : > { %v658_v29 = vadd.f32 %v2770_v62, %v637_v23  ;;  %v623_v32 = vmul.f32 %v2754_v52, %v2862_v25  ;;  %v622_v30 = vmul.f32 %v2754_v52, %v2864_v26 }
  0xc1   : > { %v674_v35 = vmax.f32 %v658_v29, 0.0  ;;  %v639_v37 = vadd.f32 %v623_v32, %v522_v27  ;;  %v638_v36 = vadd.f32 %v622_v30, %v521_v24 }
  0xc2   : > { %v293_v41 = vpop.permute.xlu1 %292  ;;  %v2873_v39 = vpop.permute.xlu0 %570 }
  0xc3   : > { %v741_v42 = vrot.slane %v674_v35, 6  ;;  %v660_v43 = vadd.f32 %v2770_v62, %v639_v37  ;;  %v659_v44 = vadd.f32 %v2770_v62, %v638_v36  ;;  %v624_v46 = vmul.f32 %v2754_v52, %v2873_v39 }
  0xc4   : > { %v801_v40 = vrot.slane %v674_v35, 7 }
  0xc5   : > { %v676_v47 = vmax.f32 %v660_v43, 0.0  ;;  %v675_v48 = vmax.f32 %v659_v44, 0.0  ;;  %v764_v50 = vsel %vm216_vm0, %v740_v54, %v741_v42  ;;  %v640_v51 = vadd.f32 %v624_v46, %v523_v45 }
  0xc6   : > { %v298_v53 = vpop.permute.xlu1 %297  ;;  %v459_v60 = vpop.permute.xlu0 %458  ;;  %v824_v0 = vsel %vm382_vm1, %v800_v57, %v801_v40  ;;  %v2890_v12 = vsel %vm196_vm3, %v764_v50, 0.0  ;;  %v342_v44 = vmul.f32 %v2746_v33, %v293_v41 }
  0xc7   : > { %v743_v61 = vrot.slane %v676_v47, 6  ;;  %v742_v63 = vrot.slane %v675_v48, 6  ;;  %v661_v7 = vadd.f32 %v2770_v62, %v640_v51  ;;  %v802_v8 = vrot.slane %v675_v48, 7 }
  0xc8   : > { %v803_v9 = vrot.slane %v676_v47, 7  ;;  %v837_v17 = vsel %vm194_vm2, %v824_v0, 0.0  ;;  %v508_v36 = vmul.f32 %v2741_v3, %v459_v60  ;;  %v730_v38 = vpack.c.bf16 %v675_v48, %v674_v35 }
  0xc9   : > { %v2886_v11 = vsel %vm216_vm0, %v741_v42, %v742_v63  ;;  %v762_v54 = vsel %vm216_vm0, %v742_v63, %v743_v61  ;;  %v2894_v14 = vmax.f32 %v661_v7, 0.0  ;;  %v823_v57 = vsel %vm382_vm1, %v801_v40, %v802_v8 }
  0xca   : > { %v464_v15 = vpop.permute.xlu1 %463  ;;  %v303_v18 = vpop.permute.xlu0 %302  ;;  %v791_v19 = vpack.c.bf16 %v2886_v11, %v2890_v12  ;;  %v851_v20 = vpack.c.bf16 %v823_v57, %v837_v17  ;;  %v822_v22 = vsel %vm382_vm1, %v802_v8, %v803_v9  ;;  %v2913_v34 = vsel %vm196_vm3, %v762_v54, 0.0 }
  0xcb   : > { %v744_v23 = vrot.slane %v2894_v14, 6  ;;  %v804_v24 = vrot.slane %v2894_v14, 7  ;;  %v839_v30 = vsel %vm194_vm2, %v822_v22, 0.0  ;;  %v509_v45 = vmul.f32 %v2741_v3, %v464_v15 }
  0xcc   : > { %869 = vrot.lane.b32.xlu0 %v851_v20, %s2552_s6  ;;  %v524_v50 = vadd.f32 %v508_v36, %v342_v44  ;;  %v731_v48 = vpack.c.bf16 %v2894_v14, %v676_v47  ;;  %v343_v60 = vmul.f32 %v2746_v33, %v298_v53  ;;  %v344_v41 = vmul.f32 %v2746_v33, %v303_v18 }
  0xcd   : > { %v821_v32 = vsel %vm382_vm1, %v803_v9, %v804_v24  ;;  %v2917_v37 = vsel %vm216_vm0, %v743_v61, %v744_v23 }
  0xce   : > { %v308_v27 = vpop.permute.xlu1 %307  ;;  %v469_v29 = vpop.permute.xlu0 %468  ;;  %v852_v42 = vpack.c.bf16 %v821_v32, %v839_v30  ;;  %v792_v43 = vpack.c.bf16 %v2917_v37, %v2913_v34  ;;  %v525_v63 = vadd.f32 %v509_v45, %v343_v60 }
  0xcf   : > { %v510_v51 = vmul.f32 %v2741_v3, %v469_v29  ;;  %v345_v57 = vmul.f32 %v2746_v33, %v308_v27 }
  0xd0   : > { %893 = vrot.lane.b32.xlu0 %v730_v38, %s2553_s7  ;;  %871 = vrot.lane.b32.xlu1 %v852_v42, %s2552_s6 }
  0xd1   : > { %v526_v8 = vadd.f32 %v510_v51, %v344_v41 }
  0xd2   : > { %v2926_v46 = vpop.permute.xlu1 %575  ;;  %v474_v40 = vpop.permute.xlu0 %473 }
  0xd3   : > { %v625_v35 = vmul.f32 %v2754_v52, %v2926_v46  ;;  %v511_v53 = vmul.f32 %v2741_v3, %v474_v40 }
  0xd4   : > { %895 = vrot.lane.b32.xlu1 %v731_v48, %s2553_s7 }
  0xd5   : > { %v641_v61 = vadd.f32 %v625_v35, %v524_v50  ;;  %v527_v30 = vadd.f32 %v511_v53, %v345_v57 }
  0xd6   : > { %v2935_v0 = vpop.permute.xlu1 %585  ;;  %v2937_v7 = vpop.permute.xlu0 %580 }
  0xd7   : > { %v662_v9 = vadd.f32 %v2770_v62, %v641_v61  ;;  %v627_v54 = vmul.f32 %v2754_v52, %v2935_v0  ;;  %v626_v47 = vmul.f32 %v2754_v52, %v2937_v7 }
  0xd9   : > { %v678_v14 = vmax.f32 %v662_v9, 0.0  ;;  %v643_v15 = vadd.f32 %v627_v54, %v526_v8  ;;  %v642_v18 = vadd.f32 %v626_v47, %v525_v63 }
  0xda   : > { %v313_v17 = vpop.permute.xlu1 %312  ;;  %v2946_v20 = vpop.permute.xlu0 %590 }
  0xdb   : > { %v745_v22 = vrot.slane %v678_v14, 6  ;;  %v664_v29 = vadd.f32 %v2770_v62, %v643_v15  ;;  %v663_v32 = vadd.f32 %v2770_v62, %v642_v18  ;;  %v628_v36 = vmul.f32 %v2754_v52, %v2946_v20 }
  0xdc   : > { %v805_v38 = vrot.slane %v678_v14, 7  ;;  %v346_v57 = vmul.f32 %v2746_v33, %v313_v17 }
  0xdd   : > { %v680_v42 = vmax.f32 %v664_v29, 0.0  ;;  %v679_v44 = vmax.f32 %v663_v32, 0.0  ;;  %v760_v45 = vsel %vm216_vm0, %v744_v23, %v745_v22  ;;  %v644_v40 = vadd.f32 %v628_v36, %v527_v30 }
  0xde   : > { %v318_v27 = vpop.permute.xlu1 %317  ;;  %v479_v50 = vpop.permute.xlu0 %478  ;;  %v820_v48 = vsel %vm382_vm1, %v804_v24, %v805_v38  ;;  %v2959_v61 = vsel %vm196_vm3, %v760_v45, 0.0 }
  0xdf   : > { %v747_v51 = vrot.slane %v680_v42, 6  ;;  %v746_v35 = vrot.slane %v679_v44, 6  ;;  %v665_v60 = vadd.f32 %v2770_v62, %v644_v40  ;;  %v806_v41 = vrot.slane %v679_v44, 7 }
  0xe0   : > { %v512_v63 = vmul.f32 %v2741_v3, %v479_v50  ;;  %v807_v8 = vrot.slane %v680_v42, 7  ;;  %v841_v15 = vsel %vm194_vm2, %v820_v48, 0.0  ;;  %v732_v45 = vpack.c.bf16 %v679_v44, %v678_v14 }
  0xe1   : > { %v2964_v23 = vsel %vm216_vm0, %v745_v22, %v746_v35  ;;  %v758_v9 = vsel %vm216_vm0, %v746_v35, %v747_v51  ;;  %v681_v54 = vmax.f32 %v665_v60, 0.0  ;;  %v819_v53 = vsel %vm382_vm1, %v805_v38, %v806_v41 }
  0xe2   : > { %v484_v47 = vpop.permute.xlu1 %483  ;;  %v323_v24 = vpop.permute.xlu0 %322  ;;  %v793_v18 = vpack.c.bf16 %v2964_v23, %v2959_v61  ;;  %v853_v29 = vpack.c.bf16 %v819_v53, %v841_v15  ;;  %v818_v22 = vsel %vm382_vm1, %v806_v41, %v807_v8  ;;  %v528_v36 = vadd.f32 %v512_v63, %v346_v57 }
  0xe3   : > { %v748_v32 = vrot.slane %v681_v54, 6  ;;  %v808_v30 = vrot.slane %v681_v54, 7  ;;  %v513_v38 = vmul.f32 %v2741_v3, %v484_v47  ;;  %v843_v17 = vsel %vm194_vm2, %v818_v22, 0.0 }
  0xe4   : > { %873 = vrot.lane.b32.xlu0 %v853_v29, %s2552_s6  ;;  %v2994_v41 = vsel %vm196_vm3, %v758_v9, 0.0  ;;  %v347_v63 = vmul.f32 %v2746_v33, %v318_v27  ;;  %v348_v47 = vmul.f32 %v2746_v33, %v323_v24  ;;  %v733_v57 = vpack.c.bf16 %v681_v54, %v680_v42 }
  0xe5   : > { %v817_v35 = vsel %vm382_vm1, %v807_v8, %v808_v30  ;;  %v2987_v48 = vsel %vm216_vm0, %v747_v51, %v748_v32 }
  0xe6   : > { %v2979_v40 = vpop.permute.xlu1 %595  ;;  %v489_v50 = vpop.permute.xlu0 %488  ;;  %v854_v44 = vpack.c.bf16 %v817_v35, %v843_v17  ;;  %v794_v8 = vpack.c.bf16 %v2987_v48, %v2994_v41  ;;  %v529_v51 = vadd.f32 %v513_v38, %v347_v63  ;;  %v3092_v48 = vld [vmem:[%s3886_s1 + $0x7] ss:$0 sm:$0xff]  ;;  %v3097_v41 = vld [vmem:[%s3886_s1 + $0x1] ss:$0 sm:$0xff] }
  0xe7   : > { %v629_v60 = vmul.f32 %v2754_v52, %v2979_v40  ;;  %v514_v14 = vmul.f32 %v2741_v3, %v489_v50 }
  0xe8   : > { %897 = vrot.lane.b32.xlu0 %v732_v45, %s2553_s7  ;;  %875 = vrot.lane.b32.xlu1 %v854_v44, %s2552_s6 }
  0xe9   : > { %v645_v53 = vadd.f32 %v629_v60, %v528_v36  ;;  %v530_v29 = vadd.f32 %v514_v14, %v348_v47 }
  0xea   : > { %v3002_v15 = vpop.permute.xlu1 %605  ;;  %v3004_v3 = vpop.permute.xlu0 %600 }
  0xeb   : > { %v666_v9 = vadd.f32 %v2770_v62, %v645_v53  ;;  %v631_v27 = vmul.f32 %v2754_v52, %v3002_v15  ;;  %v630_v33 = vmul.f32 %v2754_v52, %v3004_v3 }
  0xec   : > { %899 = vrot.lane.b32.xlu1 %v733_v57, %s2553_s7 }
  0xed   : > { %v682_v24 = vmax.f32 %v666_v9, 0.0  ;;  %v647_v22 = vadd.f32 %v631_v27, %v530_v29  ;;  %v646_v36 = vadd.f32 %v630_v33, %v529_v51 }
  0xef   : > { %v749_v45 = vrot.slane %v682_v24, 6  ;;  %v668_v38 = vadd.f32 %v2770_v62, %v647_v22  ;;  %v667_v50 = vadd.f32 %v2770_v62, %v646_v36  ;;  %v809_v42 = vrot.slane %v682_v24, 7 }
  0xf1   : > { %v684_v54 = vmax.f32 %v668_v38, 0.0  ;;  %v683_v35 = vmax.f32 %v667_v50, 0.0  ;;  %v816_v17 = vsel %vm382_vm1, %v808_v30, %v809_v42  ;;  %v756_v60 = vsel %vm216_vm0, %v748_v32, %v749_v45 }
  0xf2   : > { %v845_v47 = vsel %vm194_vm2, %v816_v17, 0.0  ;;  %v785_v53 = vsel %vm196_vm3, %v756_v60, 0.0 }
  0xf3   : > { %v751_v52 = vrot.slane %v684_v54, 6  ;;  %v750_v14 = vrot.slane %v683_v35, 6  ;;  %v810_v44 = vrot.slane %v683_v35, 7  ;;  %v811_v63 = vrot.slane %v684_v54, 7 }
  0xf4   : > { %v735_v38 = vpack.c.bf16 %v2789_v16, %v684_v54 }
  0xf5   : > { %v815_v62 = vsel %vm382_vm1, %v809_v42, %v810_v44  ;;  %v813_v30 = vsel %vm382_vm1, %v811_v63, %v812_v31  ;;  %v814_v32 = vsel %vm382_vm1, %v810_v44, %v811_v63  ;;  %v755_v51 = vsel %vm216_vm0, %v749_v45, %v750_v14 }
  0xf6   : > { %v855_v57 = vpack.c.bf16 %v815_v62, %v845_v47  ;;  %v847_v9 = vsel %vm194_vm2, %v814_v32, 0.0  ;;  %v795_v29 = vpack.c.bf16 %v755_v51, %v785_v53  ;;  %v753_v27 = vsel %vm216_vm0, %v751_v52, %v752_v28 }
  0xf7   : > { %v856_v33 = vpack.c.bf16 %v813_v30, %v847_v9  ;;  %v754_v31 = vsel %vm216_vm0, %v750_v14, %v751_v52  ;;  %v734_v45 = vpack.c.bf16 %v683_v35, %v682_v24  ;;  %v691_v51 = vmul.f32 %v3092_v48, %v2759_v56  ;;  %v3107_v9 = vld [vmem:[%s3886_s1 + $0x2] ss:$0 sm:$0xff] }
  0xf8   : > { %877 = vrot.lane.b32.xlu0 %v855_v57, %s2552_s6  ;;  %v787_v22 = vsel %vm196_vm3, %v754_v31, 0.0  ;;  %vm2181_vm1 = vcmask 1046534   ;;  %vm2183_vm2 = vcmask 1047559  }
  0xf9   : > { %879 = vrot.lane.b32.xlu1 %v856_v33, %s2552_s6  ;;  %v796_v36 = vpack.c.bf16 %v753_v27, %v787_v22  ;;  %v694_v33 = vmul.f32 %v3092_v48, %v2791_v21 }
  0xfc   : > { %901 = vrot.lane.b32.xlu0 %v734_v45, %s2553_s7 }
  0xfd   : > { %903 = vrot.lane.b32.xlu1 %v735_v38, %s2553_s7 }
 0x126   : > { %v866_v28 = vpop.permute.xlu0 %865 }
 0x127   : > { %v908_v50 = vsel %vm905_vm4, %v789_v59, %v866_v28  ;;  %v692_v28 = vmul.f32 %v3092_v48, %v2776_v6 }
 0x12a   : > { %v868_v42 = vpop.permute.xlu1 %867  ;;  %v890_v17 = vpop.permute.xlu0 %889 }
 0x12b   : > { %v932_v60 = vsel %vm930_vm5, %v908_v50, %v890_v17  ;;  %v911_v16 = vsel %vm905_vm4, %v790_v10, %v868_v42  ;;  %v715_v42 = vadd.f32 %v3107_v9, %v694_v33  ;;  %v698_v33 = vmul.f32 %v3092_v48, %v2873_v39 }
 0x12c   : > { %2420 = vmatprep.mubr.msk.bf16.mxu0 %vm975_vm6, %v932_v60 }
 0x12e   : > { %v892_v24 = vpop.permute.xlu1 %891 }
 0x12f   : > { %v934_v54 = vsel %vm930_vm5, %v911_v16, %v892_v24 }
 0x130   : > { %2421 = vmatmul.mubr.msk.bf16.vlgmr.msra.gmra.mxu0 %vm975_vm6, %v934_v54  ;;  %v713_v54 = vadd.f32 %v3107_v9, %v692_v28  ;;  %v719_v28 = vadd.f32 %v3107_v9, %v698_v33 }
 0x13e   : > { %v870_v35 = vpop.permute.xlu0 %869 }
 0x13f   : > { %v914_v49 = vsel %vm905_vm4, %v791_v19, %v870_v35 }
 0x142   : > { %v872_v58 = vpop.permute.xlu1 %871  ;;  %v894_v59 = vpop.permute.xlu0 %893 }
 0x143   : > { %v936_v52 = vsel %vm930_vm5, %v914_v49, %v894_v59  ;;  %v917_v1 = vsel %vm905_vm4, %v792_v43, %v872_v58 }
 0x144   : > { %2424 = vmatprep.mubr.msk.bf16.mxu0 %vm975_vm6, %v936_v52 }
 0x146   : > { %v896_v4 = vpop.permute.xlu1 %895 }
 0x147   : > { %v938_v10 = vsel %vm930_vm5, %v917_v1, %v896_v4 }
 0x148   : > { %2425 = vmatmul.mubr.msk.bf16.gmra.mxu0 %vm975_vm6, %v938_v10 }
 0x156   : > { %v874_v14 = vpop.permute.xlu0 %873 }
 0x157   : > { %v920_v11 = vsel %vm905_vm4, %v793_v18, %v874_v14 }
 0x15a   : > { %v876_v12 = vpop.permute.xlu1 %875  ;;  %v898_v19 = vpop.permute.xlu0 %897 }
 0x15b   : > { %v940_v44 = vsel %vm930_vm5, %v920_v11, %v898_v19  ;;  %v923_v34 = vsel %vm905_vm4, %v794_v8, %v876_v12  ;;  %v693_v8 = vmul.f32 %v3092_v48, %v2774_v5 }
 0x15c   : > { %2428 = vmatprep.mubr.msk.bf16.mxu0 %vm975_vm6, %v940_v44 }
 0x15d   : > { %v714_v27 = vadd.f32 %v3107_v9, %v693_v8  ;;  %v697_v8 = vmul.f32 %v3092_v48, %v2862_v25 }
 0x15e   : > { %v900_v37 = vpop.permute.xlu1 %899 }
 0x15f   : > { %v942_v43 = vsel %vm930_vm5, %v923_v34, %v900_v37 }
 0x160   : > { %2429 = vmatmul.mubr.msk.bf16.gmra.mxu0 %vm975_vm6, %v942_v43 }
 0x16a   : > { %v878_v63 = vpop.permute.xlu0 %877 }
 0x16b   : > { %v880_v61 = vpop.permute.xlu1 %879  ;;  %v926_v23 = vsel %vm905_vm4, %v795_v29, %v878_v63 }
 0x16c   : > { %v929_v47 = vsel %vm905_vm4, %v796_v36, %v880_v61  ;;  %v712_v36 = vadd.f32 %v3107_v9, %v691_v51  ;;  %v695_v51 = vmul.f32 %v3092_v48, %v2853_v13 }
 0x16e   : > { %v902_v18 = vpop.permute.xlu0 %901  ;;  %v716_v25 = vadd.f32 %v3107_v9, %v695_v51 }
 0x16f   : > { %v944_v53 = vsel %vm930_vm5, %v926_v23, %v902_v18  ;;  %v904_v62 = vpop.permute.xlu1 %903 }
 0x170   : > { %v946_v30 = vsel %vm930_vm5, %v929_v47, %v904_v62  ;;  %2432 = vmatprep.mubr.msk.bf16.mxu0 %vm975_vm6, %v944_v53 }
 0x171   : > { %2433 = vmatmul.mubr.msk.bf16.gmra.mxu0 %vm975_vm6, %v946_v30 }
 0x1f0   : > { %v2422_v32 = vpop.f32.mrf.mxu0 }
 0x1f1   : > { %v1035_v57 = vadd.f32 %v2422_v32, %v3097_v41 }
 0x1f2   : > { %v1026_v29 = vpop.f32.mrf.mxu0 }
 0x1f3   : > { %v1091_v31 = vmax.f32 %v1035_v57, 0.0  ;;  %v1027_v5 = vadd.f32 %v3097_v41, %v1026_v29 }
 0x1f4   : > { %v2423_v22 = vpop.f32.mrf.mxu0 }
 0x1f5   : > { %v1107_v56 = vadd.f32 %v1091_v31, %v714_v27  ;;  %v1089_v45 = vmax.f32 %v1027_v5, 0.0  ;;  %v1038_v38 = vadd.f32 %v2423_v22, %v3097_v41  ;;  %v718_v27 = vadd.f32 %v3107_v9, %v697_v8 }
 0x1f6   : > { %v1029_v50 = vpop.f32.mrf.mxu0 }
 0x1f7   : > { %v1105_v17 = vadd.f32 %v1089_v45, %v712_v36  ;;  %v1092_v60 = vmax.f32 %v1038_v38, 0.0  ;;  %v1030_v21 = vadd.f32 %v3097_v41, %v1029_v50  ;;  %v1123_v16 = vmax.f32 %v1107_v56, 0.0 }
 0x1f8   : > { %v696_v45 = vmul.f32 %v3092_v48, %v2864_v26 }
 0x1f9   : > { %v1108_v24 = vadd.f32 %v1092_v60, %v715_v42  ;;  %v1090_v35 = vmax.f32 %v1030_v21, 0.0  ;;  %v3120_v49 = vmax.f32 %v1105_v17, 0.0  ;;  %v1148_v59 = vrot.slane %v1123_v16, 4 }
 0x1fa   : > { %v1209_v6 = vrot.slane %v1123_v16, 6 }
 0x1fb   : > { %v3122_v58 = vmax.f32 %v1108_v24, 0.0  ;;  %v1106_v52 = vadd.f32 %v1090_v35, %v713_v54  ;;  %v1146_v11 = vrot.slane %v3120_v49, 4  ;;  %v1207_v44 = vrot.slane %v3120_v49, 6 }
 0x1fd   : > { %v1149_v1 = vrot.slane %v3122_v58, 4  ;;  %v1210_v4 = vrot.slane %v3122_v58, 6  ;;  %v3128_v10 = vpack.c.bf16 %v3122_v58, %v1123_v16  ;;  %v1122_v14 = vmax.f32 %v1106_v52, 0.0 }
 0x1fe   : > { %v717_v16 = vadd.f32 %v3107_v9, %v696_v45  ;;  %v699_v45 = vmul.f32 %v3092_v48, %v2926_v46 }
 0x1ff   : > { %v1235_v12 = vsel %vm216_vm0, %v1209_v6, %v1210_v4  ;;  %v3136_v19 = vsel %vm1162_vm7, %v1148_v59, %v1149_v1  ;;  %v1147_v34 = vrot.slane %v1122_v14, 4  ;;  %v1208_v37 = vrot.slane %v1122_v14, 6 }
 0x200   : > { %v3140_v43 = vpack.c.bf16 %v1122_v14, %v3120_v49 }
 0x201   : > { %v1236_v63 = vsel %vm216_vm0, %v1208_v37, %v1209_v6  ;;  %v3148_v61 = vsel %vm216_vm0, %v1207_v44, %v1208_v37  ;;  %v1176_v23 = vsel %vm1162_vm7, %v1147_v34, %v1148_v59  ;;  %v3156_v18 = vsel %vm1162_vm7, %v1146_v11, %v1147_v34 }
 0x202   : > { %v1241_v47 = vsel %vm196_vm3, %v1236_v63, 0.0  ;;  %v3162_v53 = vsel %vm198_vm8, %v1176_v23, 0.0 }
 0x203   : > { %v1256_v62 = vpack.c.bf16 %v1235_v12, %v1241_v47  ;;  %v1200_v30 = vpack.c.bf16 %v3136_v19, %v3162_v53 }
 0x205   : > { %1273 = vrot.lane.b32.xlu1 %v1256_v62, %s2552_s6 }
 0x208   : > { %v2426_v32 = vpop.f32.mrf.mxu0 }
 0x209   : > { %v1051_v57 = vadd.f32 %v2426_v32, %v3097_v41  ;;  %1297 = vrot.lane.b32.xlu1 %v3128_v10, %s2553_s7 }
 0x20a   : > { %v1042_v29 = vpop.f32.mrf.mxu0 }
 0x20b   : > { %v1095_v31 = vmax.f32 %v1051_v57, 0.0  ;;  %v1043_v5 = vadd.f32 %v3097_v41, %v1042_v29 }
 0x20c   : > { %v2427_v22 = vpop.f32.mrf.mxu0 }
 0x20d   : > { %v1111_v36 = vadd.f32 %v1095_v31, %v718_v27  ;;  %v1093_v56 = vmax.f32 %v1043_v5, 0.0  ;;  %v1054_v13 = vadd.f32 %v2427_v22, %v3097_v41 }
 0x20e   : > { %v1045_v38 = vpop.f32.mrf.mxu0 }
 0x20f   : > { %v1109_v50 = vadd.f32 %v1093_v56, %v716_v25  ;;  %v1096_v42 = vmax.f32 %v1054_v13, 0.0  ;;  %v1046_v39 = vadd.f32 %v3097_v41, %v1045_v38  ;;  %v1127_v17 = vmax.f32 %v1111_v36, 0.0 }
 0x210   : > { %v701_v56 = vmul.f32 %v3092_v48, %v2935_v0  ;;  %v720_v0 = vadd.f32 %v3107_v9, %v699_v45 }
 0x211   : > { %v1125_v60 = vmax.f32 %v1109_v50, 0.0  ;;  %v1112_v21 = vadd.f32 %v1096_v42, %v719_v28  ;;  %v1094_v24 = vmax.f32 %v1046_v39, 0.0  ;;  %v1152_v59 = vrot.slane %v1127_v17, 4 }
 0x212   : > { %v1213_v52 = vrot.slane %v1127_v17, 6  ;;  %v722_v50 = vadd.f32 %v3107_v9, %v701_v56  ;;  %v702_v42 = vmul.f32 %v3092_v48, %v2946_v20 }
 0x213   : > { %v1150_v54 = vrot.slane %v1125_v60, 4  ;;  %v1211_v35 = vrot.slane %v1125_v60, 6  ;;  %v3185_v58 = vmax.f32 %v1112_v21, 0.0  ;;  %v1110_v26 = vadd.f32 %v1094_v24, %v717_v16 }
 0x214   : > { %v700_v24 = vmul.f32 %v3092_v48, %v2937_v7  ;;  %v705_v7 = vmul.f32 %v3092_v48, %v3002_v15  ;;  %v2532_v15 = vld [vmem:[%s3887_s2 + $0x20] sm:$0xff]  }
 0x215   : > { %v1153_v6 = vrot.slane %v3185_v58, 4  ;;  %v1214_v14 = vrot.slane %v3185_v58, 6  ;;  %v3190_v12 = vpack.c.bf16 %v3185_v58, %v1127_v17  ;;  %v1234_v34 = vsel %vm216_vm0, %v1210_v4, %v1211_v35 }
 0x216   : > { %v1126_v37 = vmax.f32 %v1110_v26, 0.0  ;;  %v1174_v63 = vsel %vm1162_vm7, %v1149_v1, %v1150_v54  ;;  %v3208_v4 = vsel %vm196_vm3, %v1234_v34, 0.0  ;;  %v703_v58 = vmul.f32 %v3092_v48, %v2979_v40 }
 0x217   : > { %v1231_v23 = vsel %vm216_vm0, %v1213_v52, %v1214_v14  ;;  %v3202_v47 = vsel %vm1162_vm7, %v1152_v59, %v1153_v6  ;;  %v3212_v1 = vsel %vm198_vm8, %v1174_v63, 0.0  ;;  %v721_v63 = vadd.f32 %v3107_v9, %v700_v24 }
 0x218   : > { %v1151_v62 = vrot.slane %v1126_v37, 4  ;;  %v1212_v8 = vrot.slane %v1126_v37, 6  ;;  %v3204_v32 = vpack.c.bf16 %v1126_v37, %v1125_v60 }
 0x21a   : > { %v1232_v51 = vsel %vm216_vm0, %v1212_v8, %v1213_v52  ;;  %v3218_v57 = vsel %vm216_vm0, %v1211_v35, %v1212_v8  ;;  %v1172_v29 = vsel %vm1162_vm7, %v1151_v62, %v1152_v59  ;;  %v3224_v27 = vsel %vm1162_vm7, %v1150_v54, %v1151_v62 }
 0x21b   : > { %v1245_v33 = vsel %vm196_vm3, %v1232_v51, 0.0  ;;  %v1257_v31 = vpack.c.bf16 %v3218_v57, %v3208_v4  ;;  %v3232_v5 = vsel %vm198_vm8, %v1172_v29, 0.0  ;;  %v1201_v22 = vpack.c.bf16 %v3224_v27, %v3212_v1 }
 0x21c   : > { %v1258_v25 = vpack.c.bf16 %v1231_v23, %v1245_v33  ;;  %v1202_v36 = vpack.c.bf16 %v3202_v47, %v3232_v5  ;;  %v723_v35 = vadd.f32 %v3107_v9, %v702_v42 }
 0x21e   : > { %1277 = vrot.lane.b32.xlu1 %v1258_v25, %s2552_s6 }
 0x220   : > { %v2430_v13 = vpop.f32.mrf.mxu0 }
 0x221   : > { %v1067_v38 = vadd.f32 %v2430_v13, %v3097_v41 }
 0x222   : > { %1301 = vrot.lane.b32.xlu1 %v3190_v12, %s2553_s7  ;;  %v1058_v28 = vpop.f32.mrf.mxu0 }
 0x223   : > { %v1099_v39 = vmax.f32 %v1067_v38, 0.0  ;;  %v1059_v17 = vadd.f32 %v3097_v41, %v1058_v28  ;;  %v2531_v28 = vld [vmem:[%s3887_s2 + $0x28] sm:$0xff]  }
 0x224   : > { %v2431_v60 = vpop.f32.mrf.mxu0  ;;  %2436 = vmatprep.subr.bf16.mxu1 %v2531_v28 }
 0x225   : > { %v1115_v21 = vadd.f32 %v1099_v39, %v722_v50  ;;  %v1097_v16 = vmax.f32 %v1059_v17, 0.0  ;;  %v1070_v46 = vadd.f32 %v2431_v60, %v3097_v41  ;;  %v706_v39 = vmul.f32 %v3092_v48, %v2757_v55  ;;  %2437 = vmatpush3.bf16.msra.mxu1 %v2531_v28 }
 0x226   : > { %v1061_v54 = vpop.f32.mrf.mxu0  ;;  %v726_v55 = vadd.f32 %v3107_v9, %v705_v7  ;;  %2438 = vmatprep.subr.bf16.mxu1 %v2532_v15  ;;  %v704_v28 = vmul.f32 %v3092_v48, %v3004_v3 }
 0x227   : > { %v1113_v59 = vadd.f32 %v1097_v16, %v720_v0  ;;  %v1100_v52 = vmax.f32 %v1070_v46, 0.0  ;;  %v1062_v20 = vadd.f32 %v3097_v41, %v1061_v54  ;;  %v1131_v26 = vmax.f32 %v1115_v21, 0.0 }
 0x229   : > { %v1129_v34 = vmax.f32 %v1113_v59, 0.0  ;;  %v1116_v37 = vadd.f32 %v1100_v52, %v723_v35  ;;  %v1098_v23 = vmax.f32 %v1062_v20, 0.0  ;;  %v1156_v29 = vrot.slane %v1131_v26, 4  ;;  %2439 = vmatpush3.bf16.msra.mxu1 %v2532_v15 }
 0x22a   : > { %v1217_v33 = vrot.slane %v1131_v26, 6 }
 0x22b   : > { %v1154_v62 = vrot.slane %v1129_v34, 4  ;;  %v1215_v8 = vrot.slane %v1129_v34, 6  ;;  %v3257_v51 = vmax.f32 %v1116_v37, 0.0  ;;  %v1114_v25 = vadd.f32 %v1098_v23, %v721_v63 }
 0x22c   : > { %v724_v63 = vadd.f32 %v3107_v9, %v703_v58 }
 0x22d   : > { %v1157_v56 = vrot.slane %v3257_v51, 4  ;;  %v1218_v13 = vrot.slane %v3257_v51, 6  ;;  %v3264_v45 = vpack.c.bf16 %v3257_v51, %v1131_v26  ;;  %v1230_v38 = vsel %vm216_vm0, %v1214_v14, %v1215_v8 }
 0x22e   : > { %v1130_v50 = vmax.f32 %v1114_v25, 0.0  ;;  %v1170_v42 = vsel %vm1162_vm7, %v1153_v6, %v1154_v62  ;;  %v3298_v46 = vsel %vm196_vm3, %v1230_v38, 0.0 }
 0x22f   : > { %v1227_v14 = vsel %vm216_vm0, %v1217_v33, %v1218_v13  ;;  %v3288_v17 = vsel %vm1162_vm7, %v1156_v29, %v1157_v56  ;;  %v3302_v24 = vsel %vm198_vm8, %v1170_v42, 0.0  ;;  %v727_v42 = vadd.f32 %v3107_v9, %v706_v39 }
 0x230   : > { %v1155_v60 = vrot.slane %v1130_v50, 4  ;;  %v1216_v6 = vrot.slane %v1130_v50, 6  ;;  %v3292_v21 = vpack.c.bf16 %v1130_v50, %v1129_v34 }
 0x231   : > { %v2434_v0 = vpop.f32.mrf.mxu0 }
 0x232   : > { %v1083_v16 = vadd.f32 %v2434_v0, %v3097_v41  ;;  %v1228_v54 = vsel %vm216_vm0, %v1216_v6, %v1217_v33  ;;  %v3308_v35 = vsel %vm216_vm0, %v1215_v8, %v1216_v6  ;;  %v1168_v59 = vsel %vm1162_vm7, %v1155_v60, %v1156_v29 }
 0x233   : > { %v1074_v40 = vpop.f32.mrf.mxu0  ;;  %v3314_v52 = vsel %vm1162_vm7, %v1154_v62, %v1155_v60  ;;  %v1249_v34 = vsel %vm196_vm3, %v1228_v54, 0.0  ;;  %v1259_v37 = vpack.c.bf16 %v3308_v35, %v3298_v46  ;;  %v3324_v7 = vsel %vm198_vm8, %v1168_v59, 0.0 }
 0x234   : > { %v1103_v20 = vmax.f32 %v1083_v16, 0.0  ;;  %v1075_v26 = vadd.f32 %v3097_v41, %v1074_v40  ;;  %v1260_v23 = vpack.c.bf16 %v1227_v14, %v1249_v34  ;;  %v1203_v62 = vpack.c.bf16 %v3314_v52, %v3302_v24 }
 0x235   : > { %v2435_v8 = vpop.f32.mrf.mxu0  ;;  %v1204_v38 = vpack.c.bf16 %v3288_v17, %v3324_v7  ;;  %v725_v16 = vadd.f32 %v3107_v9, %v704_v28 }
 0x236   : > { %v1119_v29 = vadd.f32 %v1103_v20, %v726_v55  ;;  %v1101_v33 = vmax.f32 %v1075_v26, 0.0  ;;  %v1086_v25 = vadd.f32 %v2435_v8, %v3097_v41  ;;  %1281 = vrot.lane.b32.xlu1 %v1260_v23, %s2552_s6  ;;  %v2533_v55 = vld [vmem:[%s3887_s2 + $0x18] sm:$0xff]  }
 0x237   : > { %v1077_v50 = vpop.f32.mrf.mxu0  ;;  %2440 = vmatprep.subr.bf16.mxu1 %v2533_v55 }
 0x238   : > { %v1117_v14 = vadd.f32 %v1101_v33, %v724_v63  ;;  %v1104_v15 = vmax.f32 %v1086_v25, 0.0  ;;  %v1078_v58 = vadd.f32 %v3097_v41, %v1077_v50  ;;  %v1135_v60 = vmax.f32 %v1119_v29, 0.0  ;;  %2441 = vmatpush3.bf16.msra.mxu1 %v2533_v55 }
 0x23a   : > { %v1133_v6 = vmax.f32 %v1117_v14, 0.0  ;;  %v1120_v0 = vadd.f32 %v1104_v15, %v727_v42  ;;  %v1102_v40 = vmax.f32 %v1078_v58, 0.0  ;;  %1305 = vrot.lane.b32.xlu1 %v3264_v45, %s2553_s7  ;;  %v1160_v54 = vrot.slane %v1135_v60, 4 }
 0x23b   : > { %v1221_v59 = vrot.slane %v1135_v60, 6 }
 0x23c   : > { %v1158_v3 = vrot.slane %v1133_v6, 4  ;;  %v1219_v48 = vrot.slane %v1133_v6, 6  ;;  %v1136_v39 = vmax.f32 %v1120_v0, 0.0  ;;  %v1118_v41 = vadd.f32 %v1102_v40, %v725_v16 }
 0x23e   : > { %v1161_v20 = vrot.slane %v1136_v39, 4  ;;  %v1222_v26 = vrot.slane %v1136_v39, 6  ;;  %v3342_v34 = vpack.c.bf16 %v1136_v39, %v1135_v60  ;;  %v1226_v9 = vsel %vm216_vm0, %v1218_v13, %v1219_v48 }
 0x23f   : > { %v1134_v63 = vmax.f32 %v1118_v41, 0.0  ;;  %v1166_v23 = vsel %vm1162_vm7, %v1157_v56, %v1158_v3  ;;  %v1251_v50 = vsel %vm196_vm3, %v1226_v9, 0.0 }
 0x240   : > { %v1238_v8 = vsel %vm216_vm0, %v1222_v26, %v1207_v44  ;;  %v1223_v29 = vsel %vm216_vm0, %v1221_v59, %v1222_v26  ;;  %v1178_v33 = vsel %vm1162_vm7, %v1161_v20, %v1146_v11  ;;  %v3364_v13 = vsel %vm1162_vm7, %v1160_v54, %v1161_v20 }
 0x241   : > { %v1159_v51 = vrot.slane %v1134_v63, 4  ;;  %v1220_v25 = vrot.slane %v1134_v63, 6  ;;  %v1239_v56 = vsel %vm196_vm3, %v1238_v8, 0.0  ;;  %v3368_v28 = vpack.c.bf16 %v1134_v63, %v1133_v6 }
 0x242   : > { %v1255_v44 = vpack.c.bf16 %v3148_v61, %v1239_v56  ;;  %v1183_v49 = vsel %vm198_vm8, %v1178_v33, 0.0  ;;  %v1195_v11 = vsel %vm198_vm8, %v1166_v23, 0.0 }
 0x243   : > { %v1224_v42 = vsel %vm216_vm0, %v1220_v25, %v1221_v59  ;;  %v1225_v14 = vsel %vm216_vm0, %v1219_v48, %v1220_v25  ;;  %v1199_v15 = vpack.c.bf16 %v3156_v18, %v1183_v49  ;;  %v1164_v61 = vsel %vm1162_vm7, %v1159_v51, %v1160_v54  ;;  %v2534_v18 = vld [vmem:[%s3887_s2 + $0x60] sm:$0xff]   ;;  %v2536_v25 = vld [vmem:[%s3887_s2 + $0x50] sm:$0xff]  }
 0x244   : > { %1271 = vrot.lane.b32.xlu0 %v1255_v44, %s2552_s6  ;;  %v1253_v58 = vsel %vm196_vm3, %v1224_v42, 0.0  ;;  %v1261_v60 = vpack.c.bf16 %v1225_v14, %v1251_v50  ;;  %v1197_v6 = vsel %vm198_vm8, %v1164_v61, 0.0  ;;  %v1165_v0 = vsel %vm1162_vm7, %v1158_v3, %v1159_v51  ;;  %2486 = vmatprep.subr.bf16.mxu1 %v2534_v18  ;;  %v2537_v61 = vld [vmem:[%s3887_s2 + $0x48] sm:$0xff]  }
 0x245   : > { %v1262_v55 = vpack.c.bf16 %v1223_v29, %v1253_v58  ;;  %v1206_v16 = vpack.c.bf16 %v3364_v13, %v1197_v6  ;;  %v1205_v40 = vpack.c.bf16 %v1165_v0, %v1195_v11 }
 0x247   : > { %1285 = vrot.lane.b32.xlu1 %v1262_v55, %s2552_s6 }
 0x248   : > { %1295 = vrot.lane.b32.xlu0 %v3140_v43, %s2553_s7 }
 0x24b   : > { %1309 = vrot.lane.b32.xlu1 %v3342_v34, %s2553_s7 }
 0x24c   : > { %1275 = vrot.lane.b32.xlu0 %v1257_v31, %s2552_s6 }
 0x250   : > { %1299 = vrot.lane.b32.xlu0 %v3204_v32, %s2553_s7 }
 0x254   : > { %1279 = vrot.lane.b32.xlu0 %v1259_v37, %s2552_s6 }
 0x258   : > { %1303 = vrot.lane.b32.xlu0 %v3292_v21, %s2553_s7 }
 0x25c   : > { %1283 = vrot.lane.b32.xlu0 %v1261_v60, %s2552_s6 }
 0x260   : > { %1307 = vrot.lane.b32.xlu0 %v3368_v28, %s2553_s7 }
 0x277   : > { %v1274_v4 = vpop.permute.xlu1 %1273 }
 0x278   : > { %v1316_v37 = vsel %vm905_vm4, %v1200_v30, %v1274_v4 }
 0x27b   : > { %v1298_v57 = vpop.permute.xlu1 %1297 }
 0x27c   : > { %v1338_v39 = vsel %vm930_vm5, %v1316_v37, %v1298_v57  ;;  %v2538_v37 = vld [vmem:[%s3887_s2 + $0x40] sm:$0xff]  }
 0x290   : > { %v1278_v3 = vpop.permute.xlu1 %1277 }
 0x291   : > { %v1322_v53 = vsel %vm905_vm4, %v1202_v36, %v1278_v3 }
 0x294   : > { %v1302_v54 = vpop.permute.xlu1 %1301 }
 0x295   : > { %v1342_v26 = vsel %vm930_vm5, %v1322_v53, %v1302_v54 }
 0x2a8   : > { %v1282_v41 = vpop.permute.xlu1 %1281 }
 0x2a9   : > { %v1328_v47 = vsel %vm905_vm4, %v1204_v38, %v1282_v41 }
 0x2ac   : > { %v1306_v63 = vpop.permute.xlu1 %1305 }
 0x2ad   : > { %v1346_v36 = vsel %vm930_vm5, %v1328_v47, %v1306_v63 }
 0x2b6   : > { %v1272_v31 = vpop.permute.xlu0 %1271 }
 0x2b7   : > { %v1313_v46 = vsel %vm905_vm4, %v1199_v15, %v1272_v31 }
 0x2b9   : > { %v1286_v5 = vpop.permute.xlu1 %1285 }
 0x2ba   : > { %v1296_v35 = vpop.permute.xlu0 %1295 }
 0x2bb   : > { %v1336_v48 = vsel %vm930_vm5, %v1313_v46, %v1296_v35 }
 0x2bc   : > { %2442 = vmatprep.mubr.msk.bf16.mxu1 %vm975_vm6, %v1336_v48 }
 0x2bd   : > { %2443 = vmatmul.mubr.msk.bf16.vlgmr.msra.gmra.mxu1 %vm975_vm6, %v1338_v39  ;;  %v1310_v8 = vpop.permute.xlu1 %1309 }
 0x2be   : > { %v1276_v59 = vpop.permute.xlu0 %1275  ;;  %2487 = vmatpush3.bf16.msra.mxu1 %v2534_v18 }
 0x2bf   : > { %v1319_v20 = vsel %vm905_vm4, %v1201_v22, %v1276_v59 }
 0x2c2   : > { %v1300_v19 = vpop.permute.xlu0 %1299 }
 0x2c3   : > { %v1340_v30 = vsel %vm930_vm5, %v1319_v20, %v1300_v19 }
 0x2c4   : > { %2446 = vmatprep.mubr.msk.bf16.mxu1 %vm975_vm6, %v1340_v30 }
 0x2c5   : > { %2447 = vmatmul.mubr.msk.bf16.gmra.mxu1 %vm975_vm6, %v1342_v26 }
 0x2c6   : > { %v1280_v9 = vpop.permute.xlu0 %1279 }
 0x2c7   : > { %v1325_v1 = vsel %vm905_vm4, %v1203_v62, %v1280_v9  ;;  %v1334_v62 = vsel %vm905_vm4, %v1206_v16, %v1286_v5 }
 0x2c8   : > { %v1350_v7 = vsel %vm930_vm5, %v1334_v62, %v1310_v8 }
 0x2ca   : > { %v1304_v27 = vpop.permute.xlu0 %1303 }
 0x2cb   : > { %v1344_v22 = vsel %vm930_vm5, %v1325_v1, %v1304_v27 }
 0x2cc   : > { %2450 = vmatprep.mubr.msk.bf16.mxu1 %vm975_vm6, %v1344_v22 }
 0x2cd   : > { %2451 = vmatmul.mubr.msk.bf16.gmra.mxu1 %vm975_vm6, %v1346_v36 }
 0x2ce   : > { %v1284_v23 = vpop.permute.xlu0 %1283 }
 0x2cf   : > { %v1331_v24 = vsel %vm905_vm4, %v1205_v40, %v1284_v23 }
 0x2d2   : > { %v1308_v52 = vpop.permute.xlu0 %1307 }
 0x2d3   : > { %v1348_v17 = vsel %vm930_vm5, %v1331_v24, %v1308_v52 }
 0x2d4   : > { %2454 = vmatprep.mubr.msk.bf16.mxu1 %vm975_vm6, %v1348_v17 }
 0x2d5   : > { %2455 = vmatmul.mubr.msk.bf16.gmra.mxu1 %vm975_vm6, %v1350_v7 }
 0x2d6   : > { %2488 = vmatprep.mubr.msk.bf16.mxu1 %vm905_vm4, %v3140_v43  ;;  %v3476_v43 = vld [vmem:[%s3886_s1 + $0x3] ss:$0 sm:$0xff] }
 0x2dd   : > { %2489 = vmatmul.mubr.msk.bf16.vlgmr.msra.gmra.mxu1 %vm905_vm4, %v3128_v10  ;;  %v2535_v10 = vld [vmem:[%s3887_s2 + $0x58] sm:$0xff]  }
 0x2de   : > { %2492 = vmatprep.mubr.msk.bf16.mxu1 %vm905_vm4, %v3204_v32  ;;  %2458 = vmatprep.subr.bf16.mxu0 %v2535_v10 }
 0x2df   : > { %2459 = vmatpush3.bf16.msra.mxu0 %v2535_v10 }
 0x2e0   : > { %2460 = vmatprep.subr.bf16.mxu0 %v2536_v25 }
 0x2e3   : > { %2461 = vmatpush3.bf16.msra.mxu0 %v2536_v25 }
 0x2e4   : > { %2462 = vmatprep.subr.bf16.mxu0 %v2537_v61 }
 0x2e5   : > { %2493 = vmatmul.mubr.msk.bf16.gmra.mxu1 %vm905_vm4, %v3190_v12 }
 0x2e6   : > { %2496 = vmatprep.mubr.msk.bf16.mxu1 %vm905_vm4, %v3292_v21 }
 0x2e7   : > { %2463 = vmatpush3.bf16.msra.mxu0 %v2537_v61 }
 0x2e8   : > { %2464 = vmatprep.subr.bf16.mxu0 %v2538_v37 }
 0x2eb   : > { %2465 = vmatpush3.bf16.msra.mxu0 %v2538_v37 }
 0x2ed   : > { %2497 = vmatmul.mubr.msk.bf16.gmra.mxu1 %vm905_vm4, %v3264_v45 }
 0x2ee   : > { %2500 = vmatprep.mubr.msk.bf16.mxu1 %vm905_vm4, %v3368_v28 }
 0x2f5   : > { %2501 = vmatmul.mubr.msk.bf16.gmra.mxu1 %vm905_vm4, %v3342_v34 }
 0x37d   : > { %v2444_v12 = vpop.f32.mrf.mxu1 }
 0x37e   : > { %v1438_v32 = vadd.f32 %v2444_v12, %v3476_v43 }
 0x37f   : > { %v1429_v45 = vpop.f32.mrf.mxu1 }
 0x380   : > { %v1430_v21 = vadd.f32 %v3476_v43, %v1429_v45  ;;  %v3481_v29 = vmax.f32 %v1438_v32, 0.0  ;;  %v2539_v45 = vld [vmem:[%s3887_s2 + $0x38] sm:$0xff]  }
 0x381   : > { %v2445_v38 = vpop.f32.mrf.mxu1  ;;  %2466 = vmatprep.subr.bf16.mxu0 %v2539_v45 }
 0x382   : > { %v1441_v34 = vadd.f32 %v2445_v38, %v3476_v43  ;;  %v3489_v56 = vmax.f32 %v1430_v21, 0.0  ;;  %v1519_v49 = vrot.slane %v3481_v29, 4  ;;  %v1575_v58 = vrot.slane %v3481_v29, 6  ;;  %2467 = vmatpush3.bf16.msra.mxu0 %v2539_v45 }
 0x383   : > { %v1432_v33 = vpop.f32.mrf.mxu1 }
 0x384   : > { %v3483_v13 = vmax.f32 %v1441_v34, 0.0  ;;  %v1433_v51 = vadd.f32 %v3476_v43, %v1432_v33  ;;  %v1517_v60 = vrot.slane %v3489_v56, 4 }
 0x385   : > { %v2448_v28 = vpop.f32.mrf.mxu1 }
 0x386   : > { %v1520_v44 = vrot.slane %v3483_v13, 4  ;;  %v3492_v50 = vmax.f32 %v1433_v51, 0.0  ;;  %v1454_v11 = vadd.f32 %v2448_v28, %v3476_v43  ;;  %v1576_v16 = vrot.slane %v3483_v13, 6 }
 0x387   : > { %v1445_v42 = vpop.f32.mrf.mxu1  ;;  %v1509_v24 = vpack.c.bf16 %v3483_v13, %v3481_v29 }
 0x388   : > { %v1518_v14 = vrot.slane %v3492_v50, 4  ;;  %v1574_v15 = vrot.slane %v3492_v50, 6  ;;  %v1446_v6 = vadd.f32 %v3476_v43, %v1445_v42  ;;  %v3508_v55 = vsel %vm1162_vm7, %v1519_v49, %v1520_v44 }
 0x389   : > { %v2449_v0 = vpop.f32.mrf.mxu1  ;;  %v3512_v18 = vmax.f32 %v1454_v11, 0.0  ;;  %v1601_v19 = vsel %vm216_vm0, %v1575_v58, %v1576_v16 }
 0x38a   : > { %v1457_v40 = vadd.f32 %v2449_v0, %v3476_v43  ;;  %v1602_v57 = vsel %vm216_vm0, %v1574_v15, %v1575_v58  ;;  %v1546_v31 = vsel %vm1162_vm7, %v1518_v14, %v1519_v49  ;;  %v3524_v3 = vsel %vm1162_vm7, %v1517_v60, %v1518_v14  ;;  %v2540_v58 = vld [vmem:[%s3887_s2 + $0x30] sm:$0xff]  }
 0x38b   : > { %v1448_v4 = vpop.f32.mrf.mxu1  ;;  %v3532_v48 = vmax.f32 %v1446_v6, 0.0  ;;  %v1607_v54 = vsel %vm196_vm3, %v1602_v57, 0.0  ;;  %v3538_v59 = vsel %vm198_vm8, %v1546_v31, 0.0  ;;  %v1523_v53 = vrot.slane %v3512_v18, 4  ;;  %2468 = vmatprep.subr.bf16.mxu0 %v2540_v58 }
 0x38c   : > { %v3526_v46 = vmax.f32 %v1457_v40, 0.0  ;;  %v1449_v35 = vadd.f32 %v3476_v43, %v1448_v4  ;;  %v1622_v26 = vpack.c.bf16 %v1601_v19, %v1607_v54  ;;  %v1566_v63 = vpack.c.bf16 %v3508_v55, %v3538_v59  ;;  %2469 = vmatpush3.bf16.msra.mxu0 %v2540_v58 }
 0x38d   : > { %v2452_v39 = vpop.f32.mrf.mxu1  ;;  %v1579_v47 = vrot.slane %v3512_v18, 6  ;;  %v1521_v5 = vrot.slane %v3532_v48, 4 }
 0x38e   : > { %v1524_v41 = vrot.slane %v3526_v46, 4  ;;  %v3541_v20 = vmax.f32 %v1449_v35, 0.0  ;;  %v1470_v30 = vadd.f32 %v2452_v39, %v3476_v43  ;;  %1639 = vrot.lane.b32.xlu1 %v1622_v26, %s2553_s7  ;;  %v1580_v23 = vrot.slane %v3526_v46, 6 }
 0x38f   : > { %v1461_v9 = vpop.f32.mrf.mxu1  ;;  %v3595_v29 = vsel %vm1162_vm7, %v1520_v44, %v1521_v5  ;;  %v1511_v37 = vpack.c.bf16 %v3526_v46, %v3512_v18 }
 0x390   : > { %v1522_v1 = vrot.slane %v3541_v20, 4  ;;  %v1578_v27 = vrot.slane %v3541_v20, 6  ;;  %v3560_v36 = vsel %vm1162_vm7, %v1523_v53, %v1524_v41  ;;  %v3566_v52 = vmax.f32 %v1470_v30, 0.0 }
 0x391   : > { %v2453_v22 = vpop.f32.mrf.mxu1  ;;  %v1597_v25 = vsel %vm216_vm0, %v1579_v47, %v1580_v23  ;;  %v1462_v0 = vadd.f32 %v3476_v43, %v1461_v9 }
 0x392   : > { %v1473_v8 = vadd.f32 %v2453_v22, %v3476_v43  ;;  %v1598_v17 = vsel %vm216_vm0, %v1578_v27, %v1579_v47  ;;  %v1542_v7 = vsel %vm1162_vm7, %v1522_v1, %v1523_v53  ;;  %v3576_v10 = vsel %vm1162_vm7, %v1521_v5, %v1522_v1  ;;  %1663 = vrot.lane.b32.xlu1 %v1509_v24, %s2554_s10 }
 0x393   : > { %v1464_v62 = vpop.f32.mrf.mxu1  ;;  %v1611_v38 = vsel %vm196_vm3, %v1598_v17, 0.0  ;;  %v3589_v34 = vsel %vm198_vm8, %v1542_v7, 0.0  ;;  %v1527_v28 = vrot.slane %v3566_v52, 4  ;;  %v1583_v6 = vrot.slane %v3566_v52, 6 }
 0x394   : > { %v3578_v12 = vmax.f32 %v1473_v8, 0.0  ;;  %v1465_v32 = vadd.f32 %v3476_v43, %v1464_v62  ;;  %v1624_v49 = vpack.c.bf16 %v1597_v25, %v1611_v38  ;;  %v1568_v42 = vpack.c.bf16 %v3560_v36, %v3589_v34 }
 0x395   : > { %v2456_v21 = vpop.f32.mrf.mxu1  ;;  %v1573_v53 = vrot.slane %v3489_v56, 6  ;;  %v3635_v1 = vmax.f32 %v1462_v0, 0.0  ;;  %v1508_v47 = vpack.c.bf16 %v3492_v50, %v3489_v56  ;;  %v1553_v56 = vsel %vm198_vm8, %v3595_v29, 0.0 }
 0x396   : > { %v1528_v33 = vrot.slane %v3578_v12, 4  ;;  %v3598_v51 = vmax.f32 %v1465_v32, 0.0  ;;  %v1486_v61 = vadd.f32 %v2456_v21, %v3476_v43  ;;  %1643 = vrot.lane.b32.xlu1 %v1624_v49, %s2553_s7  ;;  %v1584_v57 = vrot.slane %v3578_v12, 6 }
 0x397   : > { %v1477_v11 = vpop.f32.mrf.mxu1  ;;  %v1603_v7 = vsel %vm216_vm0, %v1573_v53, %v1574_v15  ;;  %v1525_v49 = vrot.slane %v3635_v1, 4 }
 0x398   : > { %v1526_v44 = vrot.slane %v3598_v51, 4  ;;  %v1582_v14 = vrot.slane %v3598_v51, 6  ;;  %v3620_v4 = vsel %vm1162_vm7, %v1527_v28, %v1528_v33  ;;  %v1478_v31 = vadd.f32 %v3476_v43, %v1477_v11 }
 0x399   : > { %v2457_v40 = vpop.f32.mrf.mxu1  ;;  %v1506_v30 = vmax.f32 %v1486_v61, 0.0  ;;  %v1513_v61 = vpack.c.bf16 %v3578_v12, %v3566_v52  ;;  %v1512_v46 = vpack.c.bf16 %v3598_v51, %v3635_v1 }
 0x39a   : > { %v1489_v35 = vadd.f32 %v2457_v40, %v3476_v43  ;;  %v1594_v54 = vsel %vm216_vm0, %v1582_v14, %v1583_v6  ;;  %v1538_v19 = vsel %vm1162_vm7, %v1526_v44, %v1527_v28  ;;  %1667 = vrot.lane.b32.xlu1 %v1511_v37, %s2554_s10  ;;  %v3646_v22 = vmax.f32 %v1478_v31, 0.0 }
 0x39b   : > { %v1480_v39 = vpop.f32.mrf.mxu1  ;;  %v1615_v18 = vsel %vm196_vm3, %v1594_v54, 0.0  ;;  %v3644_v5 = vsel %vm198_vm8, %v1538_v19, 0.0  ;;  %v1587_v45 = vrot.slane %v1506_v30, 6  ;;  %v1577_v28 = vrot.slane %v3532_v48, 6 }
 0x39c   : > { %v1507_v26 = vmax.f32 %v1489_v35, 0.0  ;;  %v1481_v9 = vadd.f32 %v3476_v43, %v1480_v39  ;;  %v1593_v43 = vsel %vm216_vm0, %v1583_v6, %v1584_v57  ;;  %v1570_v32 = vpack.c.bf16 %v3620_v4, %v3644_v5 }
 0x39d   : > { %v1626_v17 = vpack.c.bf16 %v1593_v43, %v1615_v18  ;;  %v1531_v11 = vrot.slane %v1506_v30, 4  ;;  %v1529_v15 = vrot.slane %v3646_v22, 4  ;;  %v1567_v19 = vpack.c.bf16 %v3576_v10, %v1553_v56 }
 0x39e   : > { %v1588_v8 = vrot.slane %v1507_v26, 6  ;;  %v3648_v24 = vmax.f32 %v1481_v9, 0.0  ;;  %v1532_v62 = vrot.slane %v1507_v26, 4  ;;  %v1600_v9 = vsel %vm216_vm0, %v1576_v16, %v1577_v28 }
 0x39f   : > { %1647 = vrot.lane.b32.xlu1 %v1626_v17, %s2553_s7  ;;  %v1599_v13 = vsel %vm216_vm0, %v1577_v28, %v1578_v27  ;;  %v1609_v27 = vsel %vm196_vm3, %v1600_v9, 0.0  ;;  %v1581_v43 = vrot.slane %v3635_v1, 6  ;;  %v2555_v56 = vmov 0.0  }
 0x3a0   : > { %v1530_v21 = vrot.slane %v3648_v24, 4  ;;  %v1586_v38 = vrot.slane %v3648_v24, 6  ;;  %v1604_v25 = vsel %vm216_vm0, %v1588_v8, %v1573_v53  ;;  %v1589_v0 = vsel %vm216_vm0, %v1587_v45, %v1588_v8  ;;  %2504 = vmatprep.subr.bf16.mxu0 %v2555_v56 }
 0x3a1   : > { %v1605_v50 = vsel %vm196_vm3, %v1604_v25, 0.0  ;;  %v1548_v31 = vsel %vm1162_vm7, %v1532_v62, %v1517_v60  ;;  %v3684_v35 = vsel %vm1162_vm7, %v1531_v11, %v1532_v62  ;;  %v3703_v53 = vsel %vm1162_vm7, %v1525_v49, %v1526_v44 }
 0x3a2   : > { %v1621_v58 = vpack.c.bf16 %v1603_v7, %v1605_v50  ;;  %v1590_v6 = vsel %vm216_vm0, %v1586_v38, %v1587_v45  ;;  %v1549_v37 = vsel %vm198_vm8, %v1548_v31, 0.0  ;;  %v1534_v39 = vsel %vm1162_vm7, %v1530_v21, %v1531_v11 }
 0x3a3   : > { %v1619_v40 = vsel %vm196_vm3, %v1590_v6, 0.0  ;;  %1671 = vrot.lane.b32.xlu1 %v1513_v61, %s2554_s10  ;;  %v1565_v60 = vpack.c.bf16 %v3524_v3, %v1549_v37  ;;  %v3698_v54 = vsel %vm198_vm8, %v1534_v39, 0.0  ;;  %v1540_v3 = vsel %vm1162_vm7, %v1524_v41, %v1525_v49 }
 0x3a4   : > { %1637 = vrot.lane.b32.xlu0 %v1621_v58, %s2553_s7  ;;  %v1628_v52 = vpack.c.bf16 %v1589_v0, %v1619_v40  ;;  %v1572_v29 = vpack.c.bf16 %v3684_v35, %v3698_v54  ;;  %v3717_v10 = vsel %vm1162_vm7, %v1529_v15, %v1530_v21  ;;  %v1557_v16 = vsel %vm198_vm8, %v1540_v3, 0.0  ;;  %v2542_v35 = vld [vmem:[%s3887_s2 + $0x68] sm:$0xff]   ;;  %v2490_v54 = vpop.f32.mrf.mxu1 }
 0x3a5   : > { %v1536_v44 = vsel %vm1162_vm7, %v1528_v33, %v1529_v15  ;;  %v1569_v41 = vpack.c.bf16 %v3703_v53, %v1557_v16  ;;  %v1623_v62 = vpack.c.bf16 %v1599_v13, %v1609_v27  ;;  %v1515_v33 = vpack.c.bf16 %v1507_v26, %v1506_v30 }
 0x3a6   : > { %v3733_v18 = vsel %vm198_vm8, %v1536_v44, 0.0  ;;  %v1596_v17 = vsel %vm216_vm0, %v1580_v23, %v1581_v43  ;;  %v1595_v7 = vsel %vm216_vm0, %v1581_v43, %v1582_v14  ;;  %v1585_v26 = vrot.slane %v3646_v22, 6  ;;  %v3823_v44 = vld [vmem:[%s3886_s1 + $0x5] ss:$0 sm:$0xff] }
 0x3a7   : > { %1651 = vrot.lane.b32.xlu1 %v1628_v52, %s2553_s7  ;;  %v1571_v8 = vpack.c.bf16 %v3717_v10, %v3733_v18  ;;  %v1613_v30 = vsel %vm196_vm3, %v1596_v17, 0.0  ;;  %v1514_v21 = vpack.c.bf16 %v3648_v24, %v3646_v22  ;;  %v3818_v10 = vld [vmem:[%s3886_s1 + $0x4] ss:$0 sm:$0xff] }
 0x3a8   : > { %1661 = vrot.lane.b32.xlu0 %v1508_v47, %s2554_s10  ;;  %v1510_v47 = vpack.c.bf16 %v3541_v20, %v3532_v48  ;;  %v1625_v45 = vpack.c.bf16 %v1595_v7, %v1613_v30  ;;  %v1592_v48 = vsel %vm216_vm0, %v1584_v57, %v1585_v26  ;;  %v1591_v20 = vsel %vm216_vm0, %v1585_v26, %v1586_v38 }
 0x3a9   : > { %v1617_v23 = vsel %vm196_vm3, %v1592_v48, 0.0  ;;  %vm2179_vm0 = vcmask 1045509  }
 0x3aa   : > { %v1627_v14 = vpack.c.bf16 %v1591_v20, %v1617_v23 }
 0x3ab   : > { %1675 = vrot.lane.b32.xlu1 %v1515_v33, %s2554_s10 }
 0x3ac   : > { %1641 = vrot.lane.b32.xlu0 %v1623_v62, %s2553_s7  ;;  %v1980_v62 = vadd.f32 %v2490_v54, %v3823_v44 }
 0x3b0   : > { %1665 = vrot.lane.b32.xlu0 %v1510_v47, %s2554_s10 }
 0x3b4   : > { %1645 = vrot.lane.b32.xlu0 %v1625_v45, %s2553_s7 }
 0x3b8   : > { %1669 = vrot.lane.b32.xlu0 %v1512_v46, %s2554_s10 }
 0x3bc   : > { %1649 = vrot.lane.b32.xlu0 %v1627_v14, %s2553_s7 }
 0x3c0   : > { %1673 = vrot.lane.b32.xlu0 %v1514_v21, %s2554_s10 }
 0x400   : > { %v1640_v12 = vpop.permute.xlu1 %1639 }
 0x401   : > { %v1682_v2 = vsel %vm930_vm5, %v1566_v63, %v1640_v12 }
 0x404   : > { %v1664_v51 = vpop.permute.xlu1 %1663 }
 0x405   : > { %v1705_v22 = vsel %vm1701_vm9, %v1682_v2, %v1664_v51 }
 0x408   : > { %v1644_v1 = vpop.permute.xlu1 %1643 }
 0x409   : > { %v1688_v55 = vsel %vm930_vm5, %v1568_v42, %v1644_v1 }
 0x40c   : > { %v1668_v25 = vpop.permute.xlu1 %1667 }
 0x40d   : > { %v1709_v63 = vsel %vm1701_vm9, %v1688_v55, %v1668_v25 }
 0x411   : > { %v1648_v11 = vpop.permute.xlu1 %1647 }
 0x412   : > { %v1694_v36 = vsel %vm930_vm5, %v1570_v32, %v1648_v11 }
 0x415   : > { %v1672_v61 = vpop.permute.xlu1 %1671 }
 0x416   : > { %v1638_v57 = vpop.permute.xlu0 %1637  ;;  %v1713_v40 = vsel %vm1701_vm9, %v1694_v36, %v1672_v61 }
 0x417   : > { %v1679_v38 = vsel %vm930_vm5, %v1565_v60, %v1638_v57  ;;  %v2541_v60 = vld [vmem:[%s3887_s2 + $0x70] sm:$0xff]  }
 0x419   : > { %v1652_v34 = vpop.permute.xlu1 %1651 }
 0x41a   : > { %v1662_v28 = vpop.permute.xlu0 %1661  ;;  %v1700_v4 = vsel %vm930_vm5, %v1572_v29, %v1652_v34 }
 0x41b   : > { %v1703_v49 = vsel %vm1701_vm9, %v1679_v38, %v1662_v28 }
 0x41c   : > { %2470 = vmatprep.mubr.msk.bf16.mxu0 %vm1770_vm10, %v1703_v49 }
 0x41d   : > { %2471 = vmatmul.mubr.msk.bf16.vlgmr.msra.gmra.mxu0 %vm1770_vm10, %v1705_v22  ;;  %v1676_v52 = vpop.permute.xlu1 %1675 }
 0x41e   : > { %v1642_v24 = vpop.permute.xlu0 %1641  ;;  %v1717_v32 = vsel %vm1701_vm9, %v1700_v4, %v1676_v52  ;;  %2505 = vmatpush3.bf16.msra.mxu0 %v2541_v60 }
 0x41f   : > { %v1685_v50 = vsel %vm930_vm5, %v1567_v19, %v1642_v24  ;;  %2506 = vmatprep.subr.bf16.mxu0 %v2555_v56  ;;  %v1971_v19 = vpop.f32.mrf.mxu1 }
 0x420   : > { %v1972_v7 = vadd.f32 %v3823_v44, %v1971_v19 }
 0x421   : > { %v2491_v53 = vpop.f32.mrf.mxu1 }
 0x422   : > { %v1666_v15 = vpop.permute.xlu0 %1665  ;;  %2507 = vmatpush3.bf16.msra.mxu0 %v2542_v35  ;;  %v1983_v45 = vadd.f32 %v2491_v53, %v3823_v44 }
 0x423   : > { %v1707_v59 = vsel %vm1701_vm9, %v1685_v50, %v1666_v15  ;;  %v1974_v9 = vpop.f32.mrf.mxu1 }
 0x424   : > { %2474 = vmatprep.mubr.msk.bf16.mxu0 %vm1770_vm10, %v1707_v59  ;;  %v1975_v21 = vadd.f32 %v3823_v44, %v1974_v9 }
 0x425   : > { %2475 = vmatmul.mubr.msk.bf16.gmra.mxu0 %vm1770_vm10, %v1709_v63  ;;  %v2494_v29 = vpop.f32.mrf.mxu1 }
 0x426   : > { %v1646_v58 = vpop.permute.xlu0 %1645  ;;  %v1996_v22 = vadd.f32 %v2494_v29, %v3823_v44 }
 0x427   : > { %v1691_v6 = vsel %vm930_vm5, %v1569_v41, %v1646_v58  ;;  %v1987_v3 = vpop.f32.mrf.mxu1 }
 0x428   : > { %v1988_v24 = vadd.f32 %v3823_v44, %v1987_v3 }
 0x429   : > { %v2495_v13 = vpop.f32.mrf.mxu1 }
 0x42a   : > { %v1670_v0 = vpop.permute.xlu0 %1669  ;;  %v1999_v58 = vadd.f32 %v2495_v13, %v3823_v44 }
 0x42b   : > { %v1711_v42 = vsel %vm1701_vm9, %v1691_v6, %v1670_v0  ;;  %v1990_v27 = vpop.f32.mrf.mxu1 }
 0x42c   : > { %2478 = vmatprep.mubr.msk.bf16.mxu0 %vm1770_vm10, %v1711_v42 }
 0x42d   : > { %2479 = vmatmul.mubr.msk.bf16.gmra.mxu0 %vm1770_vm10, %v1713_v40  ;;  %v2498_v46 = vpop.f32.mrf.mxu1 }
 0x42e   : > { %v1650_v31 = vpop.permute.xlu0 %1649  ;;  %v2012_v54 = vadd.f32 %v2498_v46, %v3823_v44 }
 0x42f   : > { %v1697_v37 = vsel %vm930_vm5, %v1571_v8, %v1650_v31  ;;  %v2003_v38 = vpop.f32.mrf.mxu1 }
 0x431   : > { %v2499_v34 = vpop.f32.mrf.mxu1 }
 0x432   : > { %v1674_v39 = vpop.permute.xlu0 %1673 }
 0x433   : > { %v1715_v5 = vsel %vm1701_vm9, %v1697_v37, %v1674_v39  ;;  %v1991_v37 = vadd.f32 %v3823_v44, %v1990_v27  ;;  %v2006_v9 = vpop.f32.mrf.mxu1 }
 0x434   : > { %2482 = vmatprep.mubr.msk.bf16.mxu0 %vm1770_vm10, %v1715_v5 }
 0x435   : > { %2483 = vmatmul.mubr.msk.bf16.gmra.mxu0 %vm1770_vm10, %v1717_v32 }
 0x436   : > { %2508 = vmatprep.mubr.msk.bf16.mxu0 %vm2556_vm11, %v2555_v56 }
 0x4dd   : > { %v2472_v16 = vpop.f32.mrf.mxu0 }
 0x4de   : > { %v1830_v41 = vadd.f32 %v2472_v16, %v3818_v10 }
 0x4df   : > { %v1821_v18 = vpop.f32.mrf.mxu0 }
 0x4e0   : > { %v1886_v8 = vmax.f32 %v1830_v41, 0.0  ;;  %v1822_v43 = vadd.f32 %v3818_v10, %v1821_v18  ;;  %v2004_v41 = vadd.f32 %v3823_v44, %v2003_v38  ;;  %v2015_v18 = vadd.f32 %v2499_v34, %v3823_v44 }
 0x4e1   : > { %v2473_v33 = vpop.f32.mrf.mxu0 }
 0x4e2   : > { %v1884_v47 = vmax.f32 %v1822_v43, 0.0  ;;  %v1833_v17 = vadd.f32 %v2473_v33, %v3818_v10  ;;  %v2036_v30 = vadd.f32 %v1980_v62, %v1886_v8 }
 0x4e3   : > { %v1824_v26 = vpop.f32.mrf.mxu0 }
 0x4e4   : > { %v1887_v48 = vmax.f32 %v1833_v17, 0.0  ;;  %v1825_v20 = vadd.f32 %v3818_v10, %v1824_v26  ;;  %v2034_v23 = vadd.f32 %v1972_v7, %v1884_v47  ;;  %v2052_v1 = vmax.f32 %v2036_v30, 0.0 }
 0x4e5   : > { %v2476_v14 = vpop.f32.mrf.mxu0 }
 0x4e6   : > { %v2037_v12 = vadd.f32 %v1983_v45, %v1887_v48  ;;  %v1885_v51 = vmax.f32 %v1825_v20, 0.0  ;;  %v1846_v57 = vadd.f32 %v2476_v14, %v3818_v10  ;;  %v2050_v11 = vmax.f32 %v2034_v23, 0.0  ;;  %v2502_v48 = vpop.f32.mrf.mxu1 }
 0x4e7   : > { %v1837_v25 = vpop.f32.mrf.mxu0  ;;  %v2075_v6 = vsel %vm930_vm5, %v2052_v1, 0.0 }
 0x4e8   : > { %v2053_v28 = vmax.f32 %v2037_v12, 0.0  ;;  %v2035_v2 = vadd.f32 %v1975_v21, %v1885_v51  ;;  %v1838_v49 = vadd.f32 %v3818_v10, %v1837_v25  ;;  %v1890_v50 = vmax.f32 %v1846_v57, 0.0 }
 0x4e9   : > { %v2477_v15 = vpop.f32.mrf.mxu0  ;;  %v2066_v39 = vsel %vm930_vm5, %v2050_v11, 0.0  ;;  %v2007_v12 = vadd.f32 %v3823_v44, %v2006_v9 }
 0x4ea   : > { %v2076_v55 = vsel %vm930_vm5, %v2053_v28, 0.0  ;;  %v2051_v59 = vmax.f32 %v2035_v2, 0.0  ;;  %v1888_v63 = vmax.f32 %v1838_v49, 0.0  ;;  %v1849_v61 = vadd.f32 %v2477_v15, %v3818_v10 }
 0x4eb   : > { %v2040_v0 = vadd.f32 %v1996_v22, %v1890_v50  ;;  %v1840_v36 = vpop.f32.mrf.mxu0  ;;  %v2077_v4 = vadd.f32 %v2076_v55, %v2075_v6  ;;  %v2019_v50 = vpop.f32.mrf.mxu1 }
 0x4ec   : > { %v2067_v42 = vsel %vm930_vm5, %v2051_v59, 0.0  ;;  %v2038_v40 = vadd.f32 %v1988_v24, %v1888_v63  ;;  %v1891_v31 = vmax.f32 %v1849_v61, 0.0  ;;  %v1841_v52 = vadd.f32 %v3818_v10, %v1840_v36 }
 0x4ed   : > { %v2480_v5 = vpop.f32.mrf.mxu0  ;;  %v2056_v32 = vmax.f32 %v2040_v0, 0.0  ;;  %v2068_v19 = vadd.f32 %v2067_v42, %v2066_v39  ;;  %v2078_v27 = vrot.slane %v2077_v4, 4  ;;  %v2028_v61 = vadd.f32 %v2502_v48, %v3823_v44  ;;  %v2503_v39 = vpop.f32.mrf.mxu1 }
 0x4ee   : > { %v2041_v56 = vadd.f32 %v1999_v58, %v1891_v31  ;;  %v1889_v60 = vmax.f32 %v1841_v52, 0.0  ;;  %v1862_v35 = vadd.f32 %v2480_v5, %v3818_v10  ;;  %v2054_v29 = vmax.f32 %v2038_v40, 0.0 }
 0x4ef   : > { %v1853_v53 = vpop.f32.mrf.mxu0  ;;  %v2093_v62 = vsel %vm930_vm5, %v2056_v32, 0.0  ;;  %v2069_v7 = vrot.slane %v2068_v19, 4  ;;  %v2079_v57 = vadd.f32 %v2078_v27, %v2077_v4 }
 0x4f0   : > { %v2057_v3 = vmax.f32 %v2041_v56, 0.0  ;;  %v2039_v13 = vadd.f32 %v1991_v37, %v1889_v60  ;;  %v1894_v16 = vmax.f32 %v1862_v35, 0.0  ;;  %v1854_v8 = vadd.f32 %v3818_v10, %v1853_v53 }
 0x4f1   : > { %v2481_v43 = vpop.f32.mrf.mxu0  ;;  %v2084_v20 = vsel %vm930_vm5, %v2054_v29, 0.0  ;;  %v2070_v2 = vadd.f32 %v2069_v7, %v2068_v19  ;;  %v2080_v6 = vrot.slane %v2079_v57, 2  ;;  %v2020_v29 = vadd.f32 %v3823_v44, %v2019_v50 }
 0x4f2   : > { %v2094_v33 = vsel %vm930_vm5, %v2057_v3, 0.0  ;;  %v2055_v47 = vmax.f32 %v2039_v13, 0.0  ;;  %v1865_v17 = vadd.f32 %v2481_v43, %v3818_v10  ;;  %v2044_v26 = vadd.f32 %v2012_v54, %v1894_v16 }
 0x4f3   : > { %v2095_v30 = vadd.f32 %v2094_v33, %v2093_v62  ;;  %v1892_v45 = vmax.f32 %v1854_v8, 0.0  ;;  %v1856_v46 = vpop.f32.mrf.mxu0  ;;  %v2071_v40 = vrot.slane %v2070_v2, 2  ;;  %v2031_v3 = vadd.f32 %v2503_v39, %v3823_v44 }
 0x4f4   : > { %v2085_v23 = vsel %vm930_vm5, %v2055_v47, 0.0  ;;  %v1895_v14 = vmax.f32 %v1865_v17, 0.0  ;;  %v1857_v21 = vadd.f32 %v3818_v10, %v1856_v46  ;;  %v2060_v24 = vmax.f32 %v2044_v26, 0.0 }
 0x4f5   : > { %v2086_v51 = vadd.f32 %v2085_v23, %v2084_v20  ;;  %v2484_v1 = vpop.f32.mrf.mxu0  ;;  %v2042_v25 = vadd.f32 %v2004_v41, %v1892_v45  ;;  %v2096_v49 = vrot.slane %v2095_v30, 4  ;;  %v2072_v13 = vadd.f32 %v2071_v40, %v2070_v2  ;;  %v2022_v41 = vpop.f32.mrf.mxu1 }
 0x4f6   : > { %v2045_v38 = vadd.f32 %v2015_v18, %v1895_v14  ;;  %v1893_v28 = vmax.f32 %v1857_v21, 0.0  ;;  %v1878_v63 = vadd.f32 %v2484_v1, %v3818_v10  ;;  %v2111_v52 = vsel %vm930_vm5, %v2060_v24, 0.0 }
 0x4f7   : > { %v2087_v22 = vrot.slane %v2086_v51, 4  ;;  %v1869_v11 = vpop.f32.mrf.mxu0  ;;  %v2058_v15 = vmax.f32 %v2042_v25, 0.0  ;;  %v2097_v31 = vadd.f32 %v2096_v49, %v2095_v30  ;;  %v2081_v18 = vadd.f32 %v2080_v6, %v2079_v57 }
 0x4f8   : > { %v2061_v55 = vmax.f32 %v2045_v38, 0.0  ;;  %v2043_v59 = vadd.f32 %v2007_v12, %v1893_v28  ;;  %v1898_v34 = vmax.f32 %v1878_v63, 0.0  ;;  %v1870_v56 = vadd.f32 %v3818_v10, %v1869_v11 }
 0x4f9   : > { %v2088_v58 = vadd.f32 %v2087_v22, %v2086_v51  ;;  %v2485_v42 = vpop.f32.mrf.mxu0  ;;  %v2102_v37 = vsel %vm930_vm5, %v2058_v15, 0.0  ;;  %v2098_v27 = vrot.slane %v2097_v31, 2  ;;  %v2023_v26 = vadd.f32 %v3823_v44, %v2022_v41 }
 0x4fa   : > { %v2112_v0 = vsel %vm930_vm5, %v2061_v55, 0.0  ;;  %v2059_v36 = vmax.f32 %v2043_v59, 0.0  ;;  %v2048_v54 = vadd.f32 %v2028_v61, %v1898_v34  ;;  %v1896_v19 = vmax.f32 %v1870_v56, 0.0 }
 0x4fb   : > { %v2089_v4 = vrot.slane %v2088_v58, 2  ;;  %v2113_v5 = vadd.f32 %v2112_v0, %v2111_v52  ;;  %v1881_v53 = vadd.f32 %v2485_v42, %v3818_v10  ;;  %v1872_v9 = vpop.f32.mrf.mxu0  ;;  %v2073_v45 = vrot.slane %v2072_v13, 1 }
 0x4fc   : > { %v2103_v32 = vsel %vm930_vm5, %v2059_v36, 0.0  ;;  %v2046_v47 = vadd.f32 %v2020_v29, %v1896_v19  ;;  %v1873_v17 = vadd.f32 %v3818_v10, %v1872_v9  ;;  %v2064_v7 = vmax.f32 %v2048_v54, 0.0 }
 0x4fd   : > { %v2104_v60 = vadd.f32 %v2103_v32, %v2102_v37  ;;  %v2114_v35 = vrot.slane %v2113_v5, 4  ;;  %v2090_v8 = vadd.f32 %v2089_v4, %v2088_v58  ;;  %v1899_v43 = vmax.f32 %v1881_v53, 0.0 }
 0x4fe   : > { %v1897_v48 = vmax.f32 %v1873_v17, 0.0  ;;  %v2082_v20 = vrot.slane %v2081_v18, 1  ;;  %v2099_v23 = vadd.f32 %v2098_v27, %v2097_v31  ;;  %v2062_v1 = vmax.f32 %v2046_v47, 0.0 }
 0x4ff   : > { %v2105_v16 = vrot.slane %v2104_v60, 4  ;;  %v2115_v62 = vadd.f32 %v2114_v35, %v2113_v5  ;;  %v2049_v30 = vadd.f32 %v2031_v3, %v1899_v43  ;;  %v2091_v14 = vrot.slane %v2090_v8, 1 }
 0x500   : > { %v2047_v57 = vadd.f32 %v2023_v26, %v1897_v48  ;;  %v2129_v25 = vsel %vm930_vm5, %v2064_v7, 0.0  ;;  %v2074_v10 = vadd.f32 %v2073_v45, %v2072_v13  ;;  %v2083_v49 = vadd.f32 %v2082_v20, %v2081_v18  ;;  %v2359_v45 = vld [vmem:[%s3886_s1 + $0x6] ss:$0 sm:$0xff] }
 0x501   : > { %v2106_v33 = vadd.f32 %v2105_v16, %v2104_v60  ;;  %v2065_v21 = vmax.f32 %v2049_v30, 0.0  ;;  %v2116_v12 = vrot.slane %v2115_v62, 2  ;;  %v2100_v44 = vrot.slane %v2099_v23, 1 }
 0x502   : > { %v2063_v2 = vmax.f32 %v2047_v57, 0.0  ;;  %v2092_v22 = vadd.f32 %v2091_v14, %v2090_v8  ;;  %v2120_v50 = vsel %vm930_vm5, %v2062_v1, 0.0  ;;  %v2138_v63 = vpack.c.bf16 %v2074_v10, %v2074_v10 }
 0x503   : > { %v2107_v46 = vrot.slane %v2106_v33, 2  ;;  %v2130_v38 = vsel %vm930_vm5, %v2065_v21, 0.0  ;;  %v2117_v11 = vadd.f32 %v2116_v12, %v2115_v62  ;;  %v2139_v36 = vpack.c.bf16 %v2083_v49, %v2083_v49 }
 0x504   : > { %v2131_v28 = vadd.f32 %v2130_v38, %v2129_v25  ;;  %v2121_v55 = vsel %vm930_vm5, %v2063_v2, 0.0  ;;  %v2140_v58 = vpack.c.bf16 %v2092_v22, %v2092_v22  ;;  %v2101_v34 = vadd.f32 %v2100_v44, %v2099_v23 }
 0x505   : > { %v2108_v51 = vadd.f32 %v2107_v46, %v2106_v33  ;;  %v2122_v59 = vadd.f32 %v2121_v55, %v2120_v50  ;;  %v2118_v42 = vrot.slane %v2117_v11, 1  ;;  %v2163_v52 = vunpack.c.l.b16 %v2138_v63 }
 0x506   : > { %v2132_v15 = vrot.slane %v2131_v28, 4  ;;  %v2165_v39 = vunpack.c.l.b16 %v2140_v58  ;;  %v2164_v32 = vunpack.c.l.b16 %v2139_v36  ;;  %v2141_v56 = vpack.c.bf16 %v2101_v34, %v2101_v34 }
 0x507   : > { %v2109_v24 = vrot.slane %v2108_v51, 1  ;;  %v2123_v0 = vrot.slane %v2122_v59, 4  ;;  %v2119_v60 = vadd.f32 %v2118_v42, %v2117_v11 }
 0x508   : > { %v2133_v61 = vadd.f32 %v2132_v15, %v2131_v28  ;;  %v2172_v19 = vsel %vm2171_vm12, %v2164_v32, %v2163_v52  ;;  %v2166_v13 = vunpack.c.l.b16 %v2141_v56 }
 0x509   : > { %v2110_v6 = vadd.f32 %v2109_v24, %v2108_v51  ;;  %v2124_v31 = vadd.f32 %v2123_v0, %v2122_v59  ;;  %v2174_v9 = vsel %vm2173_vm13, %v2165_v39, %v2172_v19  ;;  %v2143_v16 = vpack.c.bf16 %v2119_v60, %v2119_v60 }
 0x50a   : > { %v2134_v40 = vrot.slane %v2133_v61, 2  ;;  %v2176_v18 = vsel %vm2175_vm14, %v2166_v13, %v2174_v9 }
 0x50b   : > { %v2142_v4 = vpack.c.bf16 %v2110_v6, %v2110_v6  ;;  %v2125_v5 = vrot.slane %v2124_v31, 2  ;;  %v2168_v62 = vunpack.c.l.b16 %v2143_v16 }
 0x50c   : > { %v2135_v37 = vadd.f32 %v2134_v40, %v2133_v61 }
 0x50d   : > { %v2126_v54 = vadd.f32 %v2125_v5, %v2124_v31  ;;  %v2167_v29 = vunpack.c.l.b16 %v2142_v4 }
 0x50e   : > { %v2136_v35 = vrot.slane %v2135_v37, 1 }
 0x50f   : > { %v2127_v3 = vrot.slane %v2126_v54, 1  ;;  %v2178_v8 = vsel %vm2177_vm15, %v2167_v29, %v2176_v18 }
 0x510   : > { %v2137_v53 = vadd.f32 %v2136_v35, %v2135_v37  ;;  %v2180_v17 = vsel %vm2179_vm0, %v2168_v62, %v2178_v8 }
 0x511   : > { %v2128_v41 = vadd.f32 %v2127_v3, %v2126_v54 }
 0x512   : > { %v2145_v27 = vpack.c.bf16 %v2137_v53, %v2137_v53 }
 0x513   : > { %v2144_v43 = vpack.c.bf16 %v2128_v41, %v2128_v41 }
 0x514   : > { %v2170_v47 = vunpack.c.l.b16 %v2145_v27 }
 0x515   : > { %v2169_v33 = vunpack.c.l.b16 %v2144_v43 }
 0x517   : > { %v2182_v7 = vsel %vm2181_vm1, %v2169_v33, %v2180_v17 }
 0x518   : > { %v2184_v30 = vsel %vm2183_vm2, %v2170_v47, %v2182_v7 }
 0x519   : > { %v2185_v26 = vpack.c.b16 %v2184_v30, %v2184_v30 }
 0x51b   : > { %2509 = vmatmul.mubr.msk.bf16.vlgmr.msra.gmra.mxu0 %vm930_vm5, %v2185_v26 }
 0x5db   : > { %v2235_v46 = vpop.f32.mrf.mxu0 }
 0x5dc   : > { %v2236_v48 = vadd.f32 %v2359_v45, %v2235_v46 }
 0x5dd   : > { %v2510_v20 = vpop.f32.mrf.mxu0 }
 0x5de   : > { %2241 = vst [vmem:[%s173_s27] sm:$0xff] %v2236_v48 }
 0x5df   : > { %v2238_v23 = vpop.f32.mrf.mxu0 }
 0x5e1   : > { %v2511_v14 = vpop.f32.mrf.mxu0 }
 0x5e2 PF: > { %s13_s12 = sadd.s32 1, %s2549_s12  }
 0x5e3   : > { %p10_p5 = scmp.ge.s32.totalorder %s13_s12, 4  }
 0x5e5   :  { %12 = sbr.rel (!%p10_p5) target bundleno = 1 (0x1), region = 62 }

</bundles_post_ra>
